<compile_context>
chip_gen: v5e
topology: v5e:2x2
jax: 0.10.0
libtpu: 0.0.40
codegen_flags: <defaults>
</compile_context>

<pallas_src>
import functools

import jax
import jax.numpy as jnp
import numpy as np
from jax import lax
from jax.experimental import pallas as pl
from jax.experimental.pallas import tpu as pltpu

LN_EPS = 1e-5


# ----------------------------------------------------------------------------- kernels
def _layer_norm(v, g, b):
    mu = jnp.mean(v, axis=-1, keepdims=True)
    var = jnp.mean((v - mu) ** 2, axis=-1, keepdims=True)
    return (v - mu) * lax.rsqrt(var + LN_EPS) * g + b


def gat_block_kernel(
    x_ref, adj_ref, pad_ref, wattn_ref,
    wqk_ref, wout_ref,
    g0_ref, b0_ref, g1_ref, b1_ref,
    w1_ref, bm1_ref, w2_ref, bm2_ref,
    *rest,
    H, A, leakage, TB, with_head,
):
    if with_head:
        gf_ref, bf_ref, wh_ref, bh_ref, out_ref, vals_ref = rest
    else:
        out_ref, vals_ref = rest

    E = H * A
    L = x_ref.shape[1]

    # Hoist weight loads / broadcasts out of the batch loop (JAX does not CSE these).
    wqk = wqk_ref[...]                 # (E, 2E) f32, fused head-major Q||K columns
    wout = wout_ref[...]               # (E, E)  f32
    g0 = g0_ref[...]
    b0 = b0_ref[...]
    g1 = g1_ref[...]
    b1 = b1_ref[...]
    w1 = w1_ref[...]                   # (E, 4E)
    bm1 = bm1_ref[...]
    w2 = w2_ref[...]                   # (4E, E)
    bm2 = bm2_ref[...]
    if with_head:
        gf = gf_ref[...]
        bf = bf_ref[...]
        wh = wh_ref[...]
        bh = bh_ref[...]
    # Scalar per-attribute attention weights (SMEM, shared across heads).
    w_a = [wattn_ref[0, a] for a in range(A)]
    neg_big = jnp.finfo(jnp.float32).min

    def body(t, carry):
        x0 = x_ref[t]                  # (L, E)
        adj = adj_ref[t]               # (L, L) bf16 {0,1}; 1.0 = edge
        pad = pad_ref[t]               # (L, 1) f32; 1.0 = padded node

        # norm_0
        x0n = _layer_norm(x0, g0, b0)

        # Fused Q/K projection: one (L,E)@(E,2E) matmul, head-major column slabs.
        qk = jnp.dot(x0n, wqk, preferred_element_type=jnp.float32)   # (L, 2E)
        q = qk[:, :E]                                                # (L, E)
        k = qk[:, E:]                                                # (L, E)
        qT = q.T                                                     # (E, L); only q transposed

        for h in range(H):
            base = h * A
            # logits[i, j] = sum_a w_a * leaky(q[j, base+a] + k[i, base+a]); only an
            # (L, L) accumulator stays live (no (A, L, L) tensor).
            logits = jnp.zeros((L, L), jnp.float32)
            for a in range(A):
                c = base + a
                s = k[:, c:c + 1] + qT[c:c + 1, :]                   # (L,1)+(1,L) -> (L,L)
                s = jnp.where(s >= 0.0, s, leakage * s)              # LeakyReLU
                logits = logits + w_a[a] * s
            # finfo.min (not -inf) so edge-less rows give a finite uniform row,
            # matching torch.masked_fill_(..., finfo.min) + softmax exactly.
            logits = jnp.where(adj > 0, logits, neg_big)
            m = jnp.max(logits, axis=-1, keepdims=True)
            e = jnp.exp(logits - m)
            p = e / jnp.sum(e, axis=-1, keepdims=True)
            # Standard order: v_h = p_h @ k_h, written into the head's lane slab.
            vals_ref[:, base:base + A] = jnp.dot(
                p, k[:, base:base + A], preferred_element_type=jnp.float32)

        # Single output projection over all heads.
        x1 = jnp.dot(vals_ref[...], wout, preferred_element_type=jnp.float32)

        # residual + norm_1 (residual uses normalized x0, as in the reference module).
        x2 = _layer_norm(x1 + x0n, g1, b1)

        # MLP (Linear -> ReLU -> Linear).
        hid = jnp.maximum(
            jnp.dot(x2, w1, preferred_element_type=jnp.float32) + bm1, 0.0)
        x3 = jnp.dot(hid, w2, preferred_element_type=jnp.float32) + bm2

        # padding mask + residual (dropout = identity in eval mode)
        x3 = jnp.where(pad > 0, 0.0, x3)
        x4 = x3 + x2

        if with_head:
            # Fused final LayerNorm + mean-pool + head linear (saves an HBM round trip).
            xn = _layer_norm(x4, gf, bf)
            pooled = jnp.mean(xn, axis=0, keepdims=True)             # (1, E)
            out_ref[t] = jnp.dot(pooled, wh,
                                 preferred_element_type=jnp.float32) + bh
        else:
            out_ref[t] = x4
        return carry

    lax.fori_loop(0, TB, body, 0)


# ----------------------------------------------------------------------------- wrappers
def _full_spec(shape):
    n = len(shape)
    return pl.BlockSpec(tuple(shape), lambda b, n=n: (0,) * n)


def _block_weights(p, H, A):
    """Wrapper-side weight permutation / packing (free; keeps kernel slices aligned)."""
    E = H * A
    w_qk = p["w_qk"].reshape(E, H, 2, A)
    w_q = w_qk[:, :, 0, :].reshape(E, E)                 # head-major Q columns
    w_k = w_qk[:, :, 1, :].reshape(E, E)                 # head-major K columns
    wqk_packed = jnp.concatenate([w_q, w_k], axis=1)     # (E, 2E) fused projection
    w_attn = p["w_attn"].reshape(1, A)                   # (1, A) f32 -> SMEM
    vmem = [
        wqk_packed, p["w_out"],
        p["ln0_g"], p["ln0_b"], p["ln1_g"], p["ln1_b"],
        p["w_mlp1"], p["b_mlp1"], p["w_mlp2"], p["b_mlp2"],
    ]
    return w_attn, vmem


def _pick_tb(B, L, E, budget_bytes=16 << 20):
    """Largest divisor of B whose double-buffered per-step blocks fit the budget.

    Cap at B//2 so the grid always has >= 2 steps (keeps both TensorCores busy on v7x).
    """
    cap = max(1, min(8, B // 2))
    per = 4 * (2 * L * E + L * L + L)        # x in + out + adj + pad per batch element
    best = 1
    for cand in range(1, cap + 1):
        if B % cand == 0 and 2 * cand * per <= budget_bytes:
            best = cand
    return best


def _vmem_limit_bytes(TB, L, E, F=None):
    """Budget from actual block sizes (double-buffered activations + weights + temps)."""
    act = 2 * TB * 4 * (2 * L * E + L * L + L)
    wts = 4 * (2 * E * E + E * E + 8 * E * E + 12 * E + ((E * F + F) if F else 0))
    scratch = 4 * L * E
    tmp = 4 * (4 * L * L + 4 * L * E + 6 * L * E)        # rough live-temporary bound
    need = act + wts + scratch + tmp
    # TODO(synk): on v5e/v6e (128 MiB VMEM) raise the cap to ~100 MiB; keep <=56 MiB on v7x.
    return int(min(96 << 20, max(32 << 20, 2 * need)))


def _block_cost(B, L, E, H, F=None):
    flops = 2 * B * L * E * (2 * E)                      # fused Q/K projection
    flops += 4 * B * E * L * L                           # pairwise scores
    flops += 6 * B * H * L * L                           # softmax
    flops += 2 * B * E * L * L                           # p @ k per head
    flops += 2 * B * L * E * E                           # out projection
    flops += 2 * 2 * B * L * E * (4 * E)                 # MLP
    flops += 12 * B * L * E                              # LN / residual / mask
    trans = B * H * L * L                                # exp
    bytes_acc = 4 * B * (2 * L * E + L) + 2 * B * L * L  # f32 x in/out + pad, bf16 adj
    bytes_acc += 4 * (2 * E * E + E * E + 8 * E * E)     # f32 weights
    if F is not None:
        flops += 2 * B * E * F + 5 * B * L * E
        bytes_acc += 4 * (E * F + B * F)
    return pl.CostEstimate(flops=int(flops), transcendentals=int(trans),
                           bytes_accessed=int(bytes_acc))


def gat_block_call(x, adj_m, pad_f, p, *, H, A, leakage, TB, head=None, cost=None):
    B, L, E = x.shape
    with_head = head is not None
    w_attn, vmem_weights = _block_weights(p, H, A)
    if with_head:
        vmem_weights = vmem_weights + list(head)         # ln_g, ln_b, w_head, b_head

    kernel = functools.partial(gat_block_kernel, H=H, A=A, leakage=leakage,
                               TB=TB, with_head=with_head)

    in_specs = [
        pl.BlockSpec((TB, L, E), lambda b: (b, 0, 0)),
        pl.BlockSpec((TB, L, L), lambda b: (b, 0, 0)),
        pl.BlockSpec((TB, L, 1), lambda b: (b, 0, 0)),
        pl.BlockSpec(memory_space=pltpu.MemorySpace.SMEM),   # w_attn scalars
    ] + [_full_spec(w.shape) for w in vmem_weights]
    # TODO(synk): mark the constant weight specs pipeline_mode=pl.Buffered(1) (single
    #             buffer) on jax versions that support the kwarg -- halves weight VMEM.

    if with_head:
        F = head[2].shape[1]
        out_shape = jax.ShapeDtypeStruct((B, 1, F), jnp.float32)
        out_spec = pl.BlockSpec((TB, 1, F), lambda b: (b, 0, 0))
    else:
        F = None
        out_shape = jax.ShapeDtypeStruct((B, L, E), jnp.float32)
        out_spec = pl.BlockSpec((TB, L, E), lambda b: (b, 0, 0))

    out = pl.pallas_call(
        kernel,
        out_shape=out_shape,
        grid=(B // TB,),
        in_specs=in_specs,
        out_specs=out_spec,
        scratch_shapes=[pltpu.VMEM((L, E), jnp.float32)],    # per-head value slabs
        compiler_params=pltpu.CompilerParams(
            dimension_semantics=("parallel",),
            vmem_limit_bytes=_vmem_limit_bytes(TB, L, E, F),
        ),
        cost_estimate=cost,
    )(x, adj_m, pad_f, w_attn, *vmem_weights)

    if with_head:
        out = out[:, 0, :]
    return out


def gat_transformer_forward(params, nodes_numerical, nodes_categorical, adj, padding,
                            *, H, leakage):
    E = params["ln_g"].shape[-1]
    A = E // H
    # Input embeddings: categorical gathers + numerical linear (glue; not a hot path).
    x = jnp.zeros(nodes_categorical.shape[:2] + (E,), jnp.float32)
    for i, tbl in enumerate(params["cat_tables"]):
        x = x + tbl[nodes_categorical[:, :, i]]
    x = x + jnp.dot(nodes_numerical, params["w_num"])

    adj_m = adj.astype(jnp.bfloat16)            # {0,1} edge mask, half the DMA of f32
    pad_f = padding.astype(jnp.float32)[..., None]

    B, L, _ = x.shape
    TB = _pick_tb(B, L, E)
    F = params["w_head"].shape[1]
    head = (params["ln_g"], params["ln_b"], params["w_head"], params["b_head"])

    blocks = params["blocks"]
    assert len(blocks) >= 1
    for i, bp in enumerate(blocks):
        is_last = i == len(blocks) - 1
        out = gat_block_call(
            x, adj_m, pad_f, bp, H=H, A=A, leakage=leakage, TB=TB,
            head=head if is_last else None,
            cost=_block_cost(B, L, E, H, F if is_last else None),
        )
        if is_last:
            return out
        x = out


# ----------------------------------------------------------------------------- reference
def _ref_forward(params, nodes_numerical, nodes_categorical, adj, padding, *, H, leakage):
    E = params["ln_g"].shape[-1]
    A = E // H
    x = jnp.zeros(nodes_categorical.shape[:2] + (E,), jnp.float32)
    for i, tbl in enumerate(params["cat_tables"]):
        x = x + tbl[nodes_categorical[:, :, i]]
    x = x + jnp.dot(nodes_numerical, params["w_num"])
    B, L, _ = x.shape
    pad_mask = padding[:, :, None]

    for p in params["blocks"]:
        x0 = _layer_norm(x, p["ln0_g"], p["ln0_b"])
        qk = x0 @ p["w_qk"]
        qk = qk.reshape(B, L, H, 2 * A).transpose(0, 2, 1, 3)
        q, k = qk[..., :A], qk[..., A:]
        attn = q[:, :, None, :, :] + k[:, :, :, None, :]
        attn = jnp.where(attn >= 0, attn, leakage * attn)
        attn = jnp.einsum("bhija,a->bhij", attn, p["w_attn"][0])
        attn = jnp.where(adj[:, None, :, :], attn, jnp.finfo(jnp.float32).min)
        attn = jax.nn.softmax(attn, axis=-1)
        values = attn @ k
        values = values.transpose(0, 2, 1, 3).reshape(B, L, E)
        x1 = values @ p["w_out"]
        x2 = _layer_norm(x1 + x0, p["ln1_g"], p["ln1_b"])
        x3 = jnp.maximum(x2 @ p["w_mlp1"] + p["b_mlp1"], 0.0) @ p["w_mlp2"] + p["b_mlp2"]
        x3 = jnp.where(pad_mask, 0.0, x3)
        x = x3 + x2

    x = _layer_norm(x, params["ln_g"], params["ln_b"])
    x = jnp.mean(x, axis=1)
    return x @ params["w_head"] + params["b_head"]


# ----------------------------------------------------------------------------- params
def init_params(key, num_features, cat_sizes, E, H, stack, out_features):
    A = E // H

    def nrm(k, shape, scale=0.1):
        return scale * jax.random.normal(k, shape, jnp.float32)

    params = {}
    key, k = jax.random.split(key)
    params["w_num"] = nrm(k, (num_features, E))

    tables = []
    for n in cat_sizes:
        key, k = jax.random.split(key)
        t = nrm(k, (n, E))
        t = t.at[0].set(0.0)          # padding_idx=0
        tables.append(t)
    params["cat_tables"] = tables

    blocks = []
    for _ in range(stack):
        key, k1, k2, k3, k4, k5, k6, k7 = jax.random.split(key, 8)
        bp = {
            "w_qk": nrm(k1, (E, 2 * E)),
            "w_attn": nrm(k2, (1, A)),
            "w_out": nrm(k3, (E, E)),
            "ln0_g": jnp.ones((1, E), jnp.float32),
            "ln0_b": jnp.zeros((1, E), jnp.float32),
            "ln1_g": jnp.ones((1, E), jnp.float32),
            "ln1_b": jnp.zeros((1, E), jnp.float32),
            "w_mlp1": nrm(k4, (E, 4 * E)),
            "b_mlp1": nrm(k5, (1, 4 * E), 0.01),
            "w_mlp2": nrm(k6, (4 * E, E)),
            "b_mlp2": nrm(k7, (1, E), 0.01),
        }
        blocks.append(bp)
    params["blocks"] = blocks

    key, k1, k2 = jax.random.split(key, 3)
    params["ln_g"] = jnp.ones((1, E), jnp.float32)
    params["ln_b"] = jnp.zeros((1, E), jnp.float32)
    params["w_head"] = nrm(k1, (E, out_features))
    params["b_head"] = nrm(k2, (1, out_features), 0.01)
    return params


# ----------------------------------------------------------------------------- main
if __name__ == "__main__":
    B, L = 2, 8
    E, H, stack, out_features = 32, 4, 2, 4
    num_features = 3
    cat_sizes = [5, 7]
    leakage = 0.2
    # dropout=0.1 in the module, but forward is eval-mode -> identity.

    key = jax.random.PRNGKey(0)
    key, kp, kn, kc0, kc1, ka, _ = jax.random.split(key, 7)

    params = init_params(kp, num_features, cat_sizes, E, H, stack, out_features)

    nodes_numerical = jax.random.normal(kn, (B, L, num_features), jnp.float32)
    nodes_categorical = jnp.stack(
        [
            jax.random.randint(kc0, (B, L), 0, cat_sizes[0]),
            jax.random.randint(kc1, (B, L), 0, cat_sizes[1]),
        ],
        axis=-1,
    )
    adj = jnp.logical_or(
        jax.random.bernoulli(ka, 0.5, (B, L, L)),
        jnp.eye(L, dtype=bool)[None, :, :],
    )
    padding = jnp.zeros((B, L), bool).at[:, L - 2:].set(True)

    out = gat_transformer_forward(
        params, nodes_numerical, nodes_categorical, adj, padding, H=H, leakage=leakage
    )
    out = jax.block_until_ready(out)

    ref = _ref_forward(
        params, nodes_numerical, nodes_categorical, adj, padding, H=H, leakage=leakage
    )
    np.testing.assert_allclose(np.asarray(out), np.asarray(ref), rtol=1e-2, atol=1e-2)

    print("KERNEL_OK")
</pallas_src>

<mosaic_0001>
module attributes {stable_mosaic.version = 11 : i64} {
  func.func @gat_block_kernel(%arg0: i32, %arg1: memref<1x8x32xf32, #tpu.memory_space<vmem>>, %arg2: memref<1x8x8xbf16, #tpu.memory_space<vmem>>, %arg3: memref<1x8x1xf32, #tpu.memory_space<vmem>>, %arg4: memref<1x8xf32, #tpu.memory_space<smem>>, %arg5: memref<32x64xf32, #tpu.memory_space<vmem>>, %arg6: memref<32x32xf32, #tpu.memory_space<vmem>>, %arg7: memref<1x32xf32, #tpu.memory_space<vmem>>, %arg8: memref<1x32xf32, #tpu.memory_space<vmem>>, %arg9: memref<1x32xf32, #tpu.memory_space<vmem>>, %arg10: memref<1x32xf32, #tpu.memory_space<vmem>>, %arg11: memref<32x128xf32, #tpu.memory_space<vmem>>, %arg12: memref<1x128xf32, #tpu.memory_space<vmem>>, %arg13: memref<128x32xf32, #tpu.memory_space<vmem>>, %arg14: memref<1x32xf32, #tpu.memory_space<vmem>>, %arg15: memref<1x8x32xf32, #tpu.memory_space<vmem>>, %arg16: memref<8x32xf32, #tpu.memory_space<vmem>>) attributes {dimension_semantics = [#tpu.dimension_semantics<parallel>], iteration_bounds = array<i64: 2>, scalar_prefetch = 0 : i64, scratch_operands = 1 : i64, tpu.core_type = #tpu.core_type<tc>, window_params = [{transform_indices = @transform_0, window_bounds = array<i64: 1, 8, 32>}, {transform_indices = @transform_1, window_bounds = array<i64: 1, 8, 8>}, {transform_indices = @transform_2, window_bounds = array<i64: 1, 8, 1>}, {transform_indices = @transform_3, window_bounds = array<i64: 1, 8>}, {pipeline_mode = #tpu.pipeline_mode<synchronous>, transform_indices = @transform_4, window_bounds = array<i64: 32, 64>}, {pipeline_mode = #tpu.pipeline_mode<synchronous>, transform_indices = @transform_5, window_bounds = array<i64: 32, 32>}, {pipeline_mode = #tpu.pipeline_mode<synchronous>, transform_indices = @transform_6, window_bounds = array<i64: 1, 32>}, {pipeline_mode = #tpu.pipeline_mode<synchronous>, transform_indices = @transform_7, window_bounds = array<i64: 1, 32>}, {pipeline_mode = #tpu.pipeline_mode<synchronous>, transform_indices = @transform_8, window_bounds = array<i64: 1, 32>}, {pipeline_mode = #tpu.pipeline_mode<synchronous>, transform_indices = @transform_9, window_bounds = array<i64: 1, 32>}, {pipeline_mode = #tpu.pipeline_mode<synchronous>, transform_indices = @transform_10, window_bounds = array<i64: 32, 128>}, {pipeline_mode = #tpu.pipeline_mode<synchronous>, transform_indices = @transform_11, window_bounds = array<i64: 1, 128>}, {pipeline_mode = #tpu.pipeline_mode<synchronous>, transform_indices = @transform_12, window_bounds = array<i64: 128, 32>}, {pipeline_mode = #tpu.pipeline_mode<synchronous>, transform_indices = @transform_13, window_bounds = array<i64: 1, 32>}, {transform_indices = @transform_14, window_bounds = array<i64: 1, 8, 32>}]} {
    %c0 = arith.constant 0 : index
    %c0_0 = arith.constant 0 : index
    %0 = vector.load %arg5[%c0, %c0_0] : memref<32x64xf32, #tpu.memory_space<vmem>>, vector<32x64xf32>
    %c0_1 = arith.constant 0 : index
    %c0_2 = arith.constant 0 : index
    %1 = vector.load %arg6[%c0_1, %c0_2] : memref<32x32xf32, #tpu.memory_space<vmem>>, vector<32x32xf32>
    %c0_3 = arith.constant 0 : index
    %c0_4 = arith.constant 0 : index
    %2 = vector.load %arg7[%c0_3, %c0_4] : memref<1x32xf32, #tpu.memory_space<vmem>>, vector<1x32xf32>
    %c0_5 = arith.constant 0 : index
    %c0_6 = arith.constant 0 : index
    %3 = vector.load %arg8[%c0_5, %c0_6] : memref<1x32xf32, #tpu.memory_space<vmem>>, vector<1x32xf32>
    %c0_7 = arith.constant 0 : index
    %c0_8 = arith.constant 0 : index
    %4 = vector.load %arg9[%c0_7, %c0_8] : memref<1x32xf32, #tpu.memory_space<vmem>>, vector<1x32xf32>
    %c0_9 = arith.constant 0 : index
    %c0_10 = arith.constant 0 : index
    %5 = vector.load %arg10[%c0_9, %c0_10] : memref<1x32xf32, #tpu.memory_space<vmem>>, vector<1x32xf32>
    %c0_11 = arith.constant 0 : index
    %c0_12 = arith.constant 0 : index
    %6 = vector.load %arg11[%c0_11, %c0_12] : memref<32x128xf32, #tpu.memory_space<vmem>>, vector<32x128xf32>
    %c0_13 = arith.constant 0 : index
    %c0_14 = arith.constant 0 : index
    %7 = vector.load %arg12[%c0_13, %c0_14] : memref<1x128xf32, #tpu.memory_space<vmem>>, vector<1x128xf32>
    %c0_15 = arith.constant 0 : index
    %c0_16 = arith.constant 0 : index
    %8 = vector.load %arg13[%c0_15, %c0_16] : memref<128x32xf32, #tpu.memory_space<vmem>>, vector<128x32xf32>
    %c0_17 = arith.constant 0 : index
    %c0_18 = arith.constant 0 : index
    %9 = vector.load %arg14[%c0_17, %c0_18] : memref<1x32xf32, #tpu.memory_space<vmem>>, vector<1x32xf32>
    %c0_19 = arith.constant 0 : index
    %c0_20 = arith.constant 0 : index
    %10 = memref.load %arg4[%c0_19, %c0_20] : memref<1x8xf32, #tpu.memory_space<smem>>
    %c0_21 = arith.constant 0 : index
    %c1 = arith.constant 1 : index
    %11 = memref.load %arg4[%c0_21, %c1] : memref<1x8xf32, #tpu.memory_space<smem>>
    %c0_22 = arith.constant 0 : index
    %c2 = arith.constant 2 : index
    %12 = memref.load %arg4[%c0_22, %c2] : memref<1x8xf32, #tpu.memory_space<smem>>
    %c0_23 = arith.constant 0 : index
    %c3 = arith.constant 3 : index
    %13 = memref.load %arg4[%c0_23, %c3] : memref<1x8xf32, #tpu.memory_space<smem>>
    %c0_24 = arith.constant 0 : index
    %c4 = arith.constant 4 : index
    %14 = memref.load %arg4[%c0_24, %c4] : memref<1x8xf32, #tpu.memory_space<smem>>
    %c0_25 = arith.constant 0 : index
    %c5 = arith.constant 5 : index
    %15 = memref.load %arg4[%c0_25, %c5] : memref<1x8xf32, #tpu.memory_space<smem>>
    %c0_26 = arith.constant 0 : index
    %c6 = arith.constant 6 : index
    %16 = memref.load %arg4[%c0_26, %c6] : memref<1x8xf32, #tpu.memory_space<smem>>
    %c0_27 = arith.constant 0 : index
    %c7 = arith.constant 7 : index
    %17 = memref.load %arg4[%c0_27, %c7] : memref<1x8xf32, #tpu.memory_space<smem>>
    %c0_i32 = arith.constant 0 : i32
    %18 = arith.index_cast %c0_i32 : i32 to index
    %c0_28 = arith.constant 0 : index
    %c0_29 = arith.constant 0 : index
    %19 = vector.load %arg1[%18, %c0_28, %c0_29] : memref<1x8x32xf32, #tpu.memory_space<vmem>>, vector<1x8x32xf32>
    %20 = vector.shape_cast %19 : vector<1x8x32xf32> to vector<8x32xf32>
    %21 = arith.index_cast %c0_i32 : i32 to index
    %c0_30 = arith.constant 0 : index
    %c0_31 = arith.constant 0 : index
    %22 = vector.load %arg2[%21, %c0_30, %c0_31] : memref<1x8x8xbf16, #tpu.memory_space<vmem>>, vector<1x8x8xbf16>
    %23 = vector.shape_cast %22 : vector<1x8x8xbf16> to vector<8x8xbf16>
    %24 = arith.index_cast %c0_i32 : i32 to index
    %c0_32 = arith.constant 0 : index
    %c0_33 = arith.constant 0 : index
    %25 = vector.load %arg3[%24, %c0_32, %c0_33] : memref<1x8x1xf32, #tpu.memory_space<vmem>>, vector<1x8x1xf32>
    %26 = vector.shape_cast %25 : vector<1x8x1xf32> to vector<8x1xf32>
    %cst = arith.constant dense<0.000000e+00> : vector<8xf32>
    %27 = vector.multi_reduction <add>, %20, %cst [1] : vector<8x32xf32> to vector<8xf32>
    %28 = vector.shape_cast %27 : vector<8xf32> to vector<8x1xf32>
    %cst_34 = arith.constant 3.200000e+01 : f32
    %29 = vector.broadcast %cst_34 : f32 to vector<8x1xf32>
    %30 = arith.divf %28, %29 : vector<8x1xf32>
    %31 = vector.broadcast %30 : vector<8x1xf32> to vector<8x32xf32>
    %32 = arith.subf %20, %31 : vector<8x32xf32>
    %33 = arith.mulf %32, %32 : vector<8x32xf32>
    %cst_35 = arith.constant dense<0.000000e+00> : vector<8xf32>
    %34 = vector.multi_reduction <add>, %33, %cst_35 [1] : vector<8x32xf32> to vector<8xf32>
    %35 = vector.shape_cast %34 : vector<8xf32> to vector<8x1xf32>
    %cst_36 = arith.constant 3.200000e+01 : f32
    %36 = vector.broadcast %cst_36 : f32 to vector<8x1xf32>
    %37 = arith.divf %35, %36 : vector<8x1xf32>
    %38 = vector.broadcast %30 : vector<8x1xf32> to vector<8x32xf32>
    %39 = arith.subf %20, %38 : vector<8x32xf32>
    %cst_37 = arith.constant 9.99999974E-6 : f32
    %40 = vector.broadcast %cst_37 : f32 to vector<8x1xf32>
    %41 = arith.addf %37, %40 : vector<8x1xf32>
    %42 = math.rsqrt %41 : vector<8x1xf32>
    %43 = vector.broadcast %42 : vector<8x1xf32> to vector<8x32xf32>
    %44 = arith.mulf %39, %43 : vector<8x32xf32>
    %45 = vector.broadcast %2 : vector<1x32xf32> to vector<8x32xf32>
    %46 = arith.mulf %44, %45 : vector<8x32xf32>
    %47 = vector.broadcast %3 : vector<1x32xf32> to vector<8x32xf32>
    %48 = arith.addf %46, %47 : vector<8x32xf32>
    %cst_38 = arith.constant dense<0.000000e+00> : vector<8x64xf32>
    %49 = tpu.matmul %48, %0, %cst_38 {dimension_numbers = #tpu.dot_dimension_numbers<[1], [0], [0], [1], [0, 0, 1, 1], [], []>} : vector<8x32xf32>, vector<32x64xf32>, vector<8x64xf32> -> vector<8x64xf32>
    %50 = vector.extract_strided_slice %49 {offsets = [0, 0], sizes = [8, 32], strides = [1, 1]} : vector<8x64xf32> to vector<8x32xf32>
    %51 = vector.extract_strided_slice %49 {offsets = [0, 32], sizes = [8, 32], strides = [1, 1]} : vector<8x64xf32> to vector<8x32xf32>
    %52 = tpu.transpose %50, [1, 0] : vector<8x32xf32> -> vector<32x8xf32>
    %cst_39 = arith.constant 0.000000e+00 : f32
    %53 = vector.broadcast %cst_39 : f32 to vector<8x8xf32>
    %54 = vector.extract_strided_slice %51 {offsets = [0, 0], sizes = [8, 1], strides = [1, 1]} : vector<8x32xf32> to vector<8x1xf32>
    %55 = vector.extract_strided_slice %52 {offsets = [0, 0], sizes = [1, 8], strides = [1, 1]} : vector<32x8xf32> to vector<1x8xf32>
    %56 = vector.broadcast %54 : vector<8x1xf32> to vector<8x8xf32>
    %57 = vector.broadcast %55 : vector<1x8xf32> to vector<8x8xf32>
    %58 = arith.addf %56, %57 : vector<8x8xf32>
    %cst_40 = arith.constant 0.000000e+00 : f32
    %59 = vector.broadcast %cst_40 : f32 to vector<8x8xf32>
    %60 = arith.cmpf oge, %58, %59 : vector<8x8xf32>
    %cst_41 = arith.constant 2.000000e-01 : f32
    %61 = vector.broadcast %cst_41 : f32 to vector<8x8xf32>
    %62 = arith.mulf %61, %58 : vector<8x8xf32>
    %63 = arith.select %60, %58, %62 : vector<8x8xi1>, vector<8x8xf32>
    %64 = vector.broadcast %10 : f32 to vector<8x8xf32>
    %65 = arith.mulf %64, %63 : vector<8x8xf32>
    %66 = arith.addf %53, %65 : vector<8x8xf32>
    %67 = vector.extract_strided_slice %51 {offsets = [0, 1], sizes = [8, 1], strides = [1, 1]} : vector<8x32xf32> to vector<8x1xf32>
    %68 = vector.extract_strided_slice %52 {offsets = [1, 0], sizes = [1, 8], strides = [1, 1]} : vector<32x8xf32> to vector<1x8xf32>
    %69 = vector.broadcast %67 : vector<8x1xf32> to vector<8x8xf32>
    %70 = vector.broadcast %68 : vector<1x8xf32> to vector<8x8xf32>
    %71 = arith.addf %69, %70 : vector<8x8xf32>
    %cst_42 = arith.constant 0.000000e+00 : f32
    %72 = vector.broadcast %cst_42 : f32 to vector<8x8xf32>
    %73 = arith.cmpf oge, %71, %72 : vector<8x8xf32>
    %cst_43 = arith.constant 2.000000e-01 : f32
    %74 = vector.broadcast %cst_43 : f32 to vector<8x8xf32>
    %75 = arith.mulf %74, %71 : vector<8x8xf32>
    %76 = arith.select %73, %71, %75 : vector<8x8xi1>, vector<8x8xf32>
    %77 = vector.broadcast %11 : f32 to vector<8x8xf32>
    %78 = arith.mulf %77, %76 : vector<8x8xf32>
    %79 = arith.addf %66, %78 : vector<8x8xf32>
    %80 = vector.extract_strided_slice %51 {offsets = [0, 2], sizes = [8, 1], strides = [1, 1]} : vector<8x32xf32> to vector<8x1xf32>
    %81 = vector.extract_strided_slice %52 {offsets = [2, 0], sizes = [1, 8], strides = [1, 1]} : vector<32x8xf32> to vector<1x8xf32>
    %82 = vector.broadcast %80 : vector<8x1xf32> to vector<8x8xf32>
    %83 = vector.broadcast %81 : vector<1x8xf32> to vector<8x8xf32>
    %84 = arith.addf %82, %83 : vector<8x8xf32>
    %cst_44 = arith.constant 0.000000e+00 : f32
    %85 = vector.broadcast %cst_44 : f32 to vector<8x8xf32>
    %86 = arith.cmpf oge, %84, %85 : vector<8x8xf32>
    %cst_45 = arith.constant 2.000000e-01 : f32
    %87 = vector.broadcast %cst_45 : f32 to vector<8x8xf32>
    %88 = arith.mulf %87, %84 : vector<8x8xf32>
    %89 = arith.select %86, %84, %88 : vector<8x8xi1>, vector<8x8xf32>
    %90 = vector.broadcast %12 : f32 to vector<8x8xf32>
    %91 = arith.mulf %90, %89 : vector<8x8xf32>
    %92 = arith.addf %79, %91 : vector<8x8xf32>
    %93 = vector.extract_strided_slice %51 {offsets = [0, 3], sizes = [8, 1], strides = [1, 1]} : vector<8x32xf32> to vector<8x1xf32>
    %94 = vector.extract_strided_slice %52 {offsets = [3, 0], sizes = [1, 8], strides = [1, 1]} : vector<32x8xf32> to vector<1x8xf32>
    %95 = vector.broadcast %93 : vector<8x1xf32> to vector<8x8xf32>
    %96 = vector.broadcast %94 : vector<1x8xf32> to vector<8x8xf32>
    %97 = arith.addf %95, %96 : vector<8x8xf32>
    %cst_46 = arith.constant 0.000000e+00 : f32
    %98 = vector.broadcast %cst_46 : f32 to vector<8x8xf32>
    %99 = arith.cmpf oge, %97, %98 : vector<8x8xf32>
    %cst_47 = arith.constant 2.000000e-01 : f32
    %100 = vector.broadcast %cst_47 : f32 to vector<8x8xf32>
    %101 = arith.mulf %100, %97 : vector<8x8xf32>
    %102 = arith.select %99, %97, %101 : vector<8x8xi1>, vector<8x8xf32>
    %103 = vector.broadcast %13 : f32 to vector<8x8xf32>
    %104 = arith.mulf %103, %102 : vector<8x8xf32>
    %105 = arith.addf %92, %104 : vector<8x8xf32>
    %106 = vector.extract_strided_slice %51 {offsets = [0, 4], sizes = [8, 1], strides = [1, 1]} : vector<8x32xf32> to vector<8x1xf32>
    %107 = vector.extract_strided_slice %52 {offsets = [4, 0], sizes = [1, 8], strides = [1, 1]} : vector<32x8xf32> to vector<1x8xf32>
    %108 = vector.broadcast %106 : vector<8x1xf32> to vector<8x8xf32>
    %109 = vector.broadcast %107 : vector<1x8xf32> to vector<8x8xf32>
    %110 = arith.addf %108, %109 : vector<8x8xf32>
    %cst_48 = arith.constant 0.000000e+00 : f32
    %111 = vector.broadcast %cst_48 : f32 to vector<8x8xf32>
    %112 = arith.cmpf oge, %110, %111 : vector<8x8xf32>
    %cst_49 = arith.constant 2.000000e-01 : f32
    %113 = vector.broadcast %cst_49 : f32 to vector<8x8xf32>
    %114 = arith.mulf %113, %110 : vector<8x8xf32>
    %115 = arith.select %112, %110, %114 : vector<8x8xi1>, vector<8x8xf32>
    %116 = vector.broadcast %14 : f32 to vector<8x8xf32>
    %117 = arith.mulf %116, %115 : vector<8x8xf32>
    %118 = arith.addf %105, %117 : vector<8x8xf32>
    %119 = vector.extract_strided_slice %51 {offsets = [0, 5], sizes = [8, 1], strides = [1, 1]} : vector<8x32xf32> to vector<8x1xf32>
    %120 = vector.extract_strided_slice %52 {offsets = [5, 0], sizes = [1, 8], strides = [1, 1]} : vector<32x8xf32> to vector<1x8xf32>
    %121 = vector.broadcast %119 : vector<8x1xf32> to vector<8x8xf32>
    %122 = vector.broadcast %120 : vector<1x8xf32> to vector<8x8xf32>
    %123 = arith.addf %121, %122 : vector<8x8xf32>
    %cst_50 = arith.constant 0.000000e+00 : f32
    %124 = vector.broadcast %cst_50 : f32 to vector<8x8xf32>
    %125 = arith.cmpf oge, %123, %124 : vector<8x8xf32>
    %cst_51 = arith.constant 2.000000e-01 : f32
    %126 = vector.broadcast %cst_51 : f32 to vector<8x8xf32>
    %127 = arith.mulf %126, %123 : vector<8x8xf32>
    %128 = arith.select %125, %123, %127 : vector<8x8xi1>, vector<8x8xf32>
    %129 = vector.broadcast %15 : f32 to vector<8x8xf32>
    %130 = arith.mulf %129, %128 : vector<8x8xf32>
    %131 = arith.addf %118, %130 : vector<8x8xf32>
    %132 = vector.extract_strided_slice %51 {offsets = [0, 6], sizes = [8, 1], strides = [1, 1]} : vector<8x32xf32> to vector<8x1xf32>
    %133 = vector.extract_strided_slice %52 {offsets = [6, 0], sizes = [1, 8], strides = [1, 1]} : vector<32x8xf32> to vector<1x8xf32>
    %134 = vector.broadcast %132 : vector<8x1xf32> to vector<8x8xf32>
    %135 = vector.broadcast %133 : vector<1x8xf32> to vector<8x8xf32>
    %136 = arith.addf %134, %135 : vector<8x8xf32>
    %cst_52 = arith.constant 0.000000e+00 : f32
    %137 = vector.broadcast %cst_52 : f32 to vector<8x8xf32>
    %138 = arith.cmpf oge, %136, %137 : vector<8x8xf32>
    %cst_53 = arith.constant 2.000000e-01 : f32
    %139 = vector.broadcast %cst_53 : f32 to vector<8x8xf32>
    %140 = arith.mulf %139, %136 : vector<8x8xf32>
    %141 = arith.select %138, %136, %140 : vector<8x8xi1>, vector<8x8xf32>
    %142 = vector.broadcast %16 : f32 to vector<8x8xf32>
    %143 = arith.mulf %142, %141 : vector<8x8xf32>
    %144 = arith.addf %131, %143 : vector<8x8xf32>
    %145 = vector.extract_strided_slice %51 {offsets = [0, 7], sizes = [8, 1], strides = [1, 1]} : vector<8x32xf32> to vector<8x1xf32>
    %146 = vector.extract_strided_slice %52 {offsets = [7, 0], sizes = [1, 8], strides = [1, 1]} : vector<32x8xf32> to vector<1x8xf32>
    %147 = vector.broadcast %145 : vector<8x1xf32> to vector<8x8xf32>
    %148 = vector.broadcast %146 : vector<1x8xf32> to vector<8x8xf32>
    %149 = arith.addf %147, %148 : vector<8x8xf32>
    %cst_54 = arith.constant 0.000000e+00 : f32
    %150 = vector.broadcast %cst_54 : f32 to vector<8x8xf32>
    %151 = arith.cmpf oge, %149, %150 : vector<8x8xf32>
    %cst_55 = arith.constant 2.000000e-01 : f32
    %152 = vector.broadcast %cst_55 : f32 to vector<8x8xf32>
    %153 = arith.mulf %152, %149 : vector<8x8xf32>
    %154 = arith.select %151, %149, %153 : vector<8x8xi1>, vector<8x8xf32>
    %155 = vector.broadcast %17 : f32 to vector<8x8xf32>
    %156 = arith.mulf %155, %154 : vector<8x8xf32>
    %157 = arith.addf %144, %156 : vector<8x8xf32>
    %cst_56 = arith.constant 0.000000e+00 : bf16
    %158 = vector.broadcast %cst_56 : bf16 to vector<8x8xbf16>
    %159 = arith.cmpf ogt, %23, %158 : vector<8x8xbf16>
    %cst_57 = arith.constant -3.40282347E+38 : f32
    %160 = vector.broadcast %cst_57 : f32 to vector<8x8xf32>
    %161 = arith.select %159, %157, %160 : vector<8x8xi1>, vector<8x8xf32>
    %cst_58 = arith.constant dense<0xFF800000> : vector<8xf32>
    %162 = vector.multi_reduction <maximumf>, %161, %cst_58 [1] : vector<8x8xf32> to vector<8xf32>
    %163 = vector.shape_cast %162 : vector<8xf32> to vector<8x1xf32>
    %164 = vector.broadcast %163 : vector<8x1xf32> to vector<8x8xf32>
    %165 = arith.subf %161, %164 : vector<8x8xf32>
    %166 = math.exp %165 : vector<8x8xf32>
    %cst_59 = arith.constant dense<0.000000e+00> : vector<8xf32>
    %167 = vector.multi_reduction <add>, %166, %cst_59 [1] : vector<8x8xf32> to vector<8xf32>
    %168 = vector.shape_cast %167 : vector<8xf32> to vector<8x1xf32>
    %169 = vector.broadcast %168 : vector<8x1xf32> to vector<8x8xf32>
    %170 = arith.divf %166, %169 : vector<8x8xf32>
    %171 = vector.extract_strided_slice %51 {offsets = [0, 0], sizes = [8, 8], strides = [1, 1]} : vector<8x32xf32> to vector<8x8xf32>
    %cst_60 = arith.constant dense<0.000000e+00> : vector<8x8xf32>
    %172 = tpu.matmul %170, %171, %cst_60 {dimension_numbers = #tpu.dot_dimension_numbers<[1], [0], [0], [1], [0, 0, 1, 1], [], []>} : vector<8x8xf32>, vector<8x8xf32>, vector<8x8xf32> -> vector<8x8xf32>
    %c0_61 = arith.constant 0 : index
    %c0_62 = arith.constant 0 : index
    %173 = vector.load %arg16[%c0_61, %c0_62] : memref<8x32xf32, #tpu.memory_space<vmem>>, vector<8x8xf32>
    tpu.vector_store %arg16[%c0_61, %c0_62], %172 {strides = array<i32>} : memref<8x32xf32, #tpu.memory_space<vmem>>, vector<8x8xf32>,
    %cst_63 = arith.constant 0.000000e+00 : f32
    %174 = vector.broadcast %cst_63 : f32 to vector<8x8xf32>
    %175 = vector.extract_strided_slice %51 {offsets = [0, 8], sizes = [8, 1], strides = [1, 1]} : vector<8x32xf32> to vector<8x1xf32>
    %176 = vector.extract_strided_slice %52 {offsets = [8, 0], sizes = [1, 8], strides = [1, 1]} : vector<32x8xf32> to vector<1x8xf32>
    %177 = vector.broadcast %175 : vector<8x1xf32> to vector<8x8xf32>
    %178 = vector.broadcast %176 : vector<1x8xf32> to vector<8x8xf32>
    %179 = arith.addf %177, %178 : vector<8x8xf32>
    %cst_64 = arith.constant 0.000000e+00 : f32
    %180 = vector.broadcast %cst_64 : f32 to vector<8x8xf32>
    %181 = arith.cmpf oge, %179, %180 : vector<8x8xf32>
    %cst_65 = arith.constant 2.000000e-01 : f32
    %182 = vector.broadcast %cst_65 : f32 to vector<8x8xf32>
    %183 = arith.mulf %182, %179 : vector<8x8xf32>
    %184 = arith.select %181, %179, %183 : vector<8x8xi1>, vector<8x8xf32>
    %185 = vector.broadcast %10 : f32 to vector<8x8xf32>
    %186 = arith.mulf %185, %184 : vector<8x8xf32>
    %187 = arith.addf %174, %186 : vector<8x8xf32>
    %188 = vector.extract_strided_slice %51 {offsets = [0, 9], sizes = [8, 1], strides = [1, 1]} : vector<8x32xf32> to vector<8x1xf32>
    %189 = vector.extract_strided_slice %52 {offsets = [9, 0], sizes = [1, 8], strides = [1, 1]} : vector<32x8xf32> to vector<1x8xf32>
    %190 = vector.broadcast %188 : vector<8x1xf32> to vector<8x8xf32>
    %191 = vector.broadcast %189 : vector<1x8xf32> to vector<8x8xf32>
    %192 = arith.addf %190, %191 : vector<8x8xf32>
    %cst_66 = arith.constant 0.000000e+00 : f32
    %193 = vector.broadcast %cst_66 : f32 to vector<8x8xf32>
    %194 = arith.cmpf oge, %192, %193 : vector<8x8xf32>
    %cst_67 = arith.constant 2.000000e-01 : f32
    %195 = vector.broadcast %cst_67 : f32 to vector<8x8xf32>
    %196 = arith.mulf %195, %192 : vector<8x8xf32>
    %197 = arith.select %194, %192, %196 : vector<8x8xi1>, vector<8x8xf32>
    %198 = vector.broadcast %11 : f32 to vector<8x8xf32>
    %199 = arith.mulf %198, %197 : vector<8x8xf32>
    %200 = arith.addf %187, %199 : vector<8x8xf32>
    %201 = vector.extract_strided_slice %51 {offsets = [0, 10], sizes = [8, 1], strides = [1, 1]} : vector<8x32xf32> to vector<8x1xf32>
    %202 = vector.extract_strided_slice %52 {offsets = [10, 0], sizes = [1, 8], strides = [1, 1]} : vector<32x8xf32> to vector<1x8xf32>
    %203 = vector.broadcast %201 : vector<8x1xf32> to vector<8x8xf32>
    %204 = vector.broadcast %202 : vector<1x8xf32> to vector<8x8xf32>
    %205 = arith.addf %203, %204 : vector<8x8xf32>
    %cst_68 = arith.constant 0.000000e+00 : f32
    %206 = vector.broadcast %cst_68 : f32 to vector<8x8xf32>
    %207 = arith.cmpf oge, %205, %206 : vector<8x8xf32>
    %cst_69 = arith.constant 2.000000e-01 : f32
    %208 = vector.broadcast %cst_69 : f32 to vector<8x8xf32>
    %209 = arith.mulf %208, %205 : vector<8x8xf32>
    %210 = arith.select %207, %205, %209 : vector<8x8xi1>, vector<8x8xf32>
    %211 = vector.broadcast %12 : f32 to vector<8x8xf32>
    %212 = arith.mulf %211, %210 : vector<8x8xf32>
    %213 = arith.addf %200, %212 : vector<8x8xf32>
    %214 = vector.extract_strided_slice %51 {offsets = [0, 11], sizes = [8, 1], strides = [1, 1]} : vector<8x32xf32> to vector<8x1xf32>
    %215 = vector.extract_strided_slice %52 {offsets = [11, 0], sizes = [1, 8], strides = [1, 1]} : vector<32x8xf32> to vector<1x8xf32>
    %216 = vector.broadcast %214 : vector<8x1xf32> to vector<8x8xf32>
    %217 = vector.broadcast %215 : vector<1x8xf32> to vector<8x8xf32>
    %218 = arith.addf %216, %217 : vector<8x8xf32>
    %cst_70 = arith.constant 0.000000e+00 : f32
    %219 = vector.broadcast %cst_70 : f32 to vector<8x8xf32>
    %220 = arith.cmpf oge, %218, %219 : vector<8x8xf32>
    %cst_71 = arith.constant 2.000000e-01 : f32
    %221 = vector.broadcast %cst_71 : f32 to vector<8x8xf32>
    %222 = arith.mulf %221, %218 : vector<8x8xf32>
    %223 = arith.select %220, %218, %222 : vector<8x8xi1>, vector<8x8xf32>
    %224 = vector.broadcast %13 : f32 to vector<8x8xf32>
    %225 = arith.mulf %224, %223 : vector<8x8xf32>
    %226 = arith.addf %213, %225 : vector<8x8xf32>
    %227 = vector.extract_strided_slice %51 {offsets = [0, 12], sizes = [8, 1], strides = [1, 1]} : vector<8x32xf32> to vector<8x1xf32>
    %228 = vector.extract_strided_slice %52 {offsets = [12, 0], sizes = [1, 8], strides = [1, 1]} : vector<32x8xf32> to vector<1x8xf32>
    %229 = vector.broadcast %227 : vector<8x1xf32> to vector<8x8xf32>
    %230 = vector.broadcast %228 : vector<1x8xf32> to vector<8x8xf32>
    %231 = arith.addf %229, %230 : vector<8x8xf32>
    %cst_72 = arith.constant 0.000000e+00 : f32
    %232 = vector.broadcast %cst_72 : f32 to vector<8x8xf32>
    %233 = arith.cmpf oge, %231, %232 : vector<8x8xf32>
    %cst_73 = arith.constant 2.000000e-01 : f32
    %234 = vector.broadcast %cst_73 : f32 to vector<8x8xf32>
    %235 = arith.mulf %234, %231 : vector<8x8xf32>
    %236 = arith.select %233, %231, %235 : vector<8x8xi1>, vector<8x8xf32>
    %237 = vector.broadcast %14 : f32 to vector<8x8xf32>
    %238 = arith.mulf %237, %236 : vector<8x8xf32>
    %239 = arith.addf %226, %238 : vector<8x8xf32>
    %240 = vector.extract_strided_slice %51 {offsets = [0, 13], sizes = [8, 1], strides = [1, 1]} : vector<8x32xf32> to vector<8x1xf32>
    %241 = vector.extract_strided_slice %52 {offsets = [13, 0], sizes = [1, 8], strides = [1, 1]} : vector<32x8xf32> to vector<1x8xf32>
    %242 = vector.broadcast %240 : vector<8x1xf32> to vector<8x8xf32>
    %243 = vector.broadcast %241 : vector<1x8xf32> to vector<8x8xf32>
    %244 = arith.addf %242, %243 : vector<8x8xf32>
    %cst_74 = arith.constant 0.000000e+00 : f32
    %245 = vector.broadcast %cst_74 : f32 to vector<8x8xf32>
    %246 = arith.cmpf oge, %244, %245 : vector<8x8xf32>
    %cst_75 = arith.constant 2.000000e-01 : f32
    %247 = vector.broadcast %cst_75 : f32 to vector<8x8xf32>
    %248 = arith.mulf %247, %244 : vector<8x8xf32>
    %249 = arith.select %246, %244, %248 : vector<8x8xi1>, vector<8x8xf32>
    %250 = vector.broadcast %15 : f32 to vector<8x8xf32>
    %251 = arith.mulf %250, %249 : vector<8x8xf32>
    %252 = arith.addf %239, %251 : vector<8x8xf32>
    %253 = vector.extract_strided_slice %51 {offsets = [0, 14], sizes = [8, 1], strides = [1, 1]} : vector<8x32xf32> to vector<8x1xf32>
    %254 = vector.extract_strided_slice %52 {offsets = [14, 0], sizes = [1, 8], strides = [1, 1]} : vector<32x8xf32> to vector<1x8xf32>
    %255 = vector.broadcast %253 : vector<8x1xf32> to vector<8x8xf32>
    %256 = vector.broadcast %254 : vector<1x8xf32> to vector<8x8xf32>
    %257 = arith.addf %255, %256 : vector<8x8xf32>
    %cst_76 = arith.constant 0.000000e+00 : f32
    %258 = vector.broadcast %cst_76 : f32 to vector<8x8xf32>
    %259 = arith.cmpf oge, %257, %258 : vector<8x8xf32>
    %cst_77 = arith.constant 2.000000e-01 : f32
    %260 = vector.broadcast %cst_77 : f32 to vector<8x8xf32>
    %261 = arith.mulf %260, %257 : vector<8x8xf32>
    %262 = arith.select %259, %257, %261 : vector<8x8xi1>, vector<8x8xf32>
    %263 = vector.broadcast %16 : f32 to vector<8x8xf32>
    %264 = arith.mulf %263, %262 : vector<8x8xf32>
    %265 = arith.addf %252, %264 : vector<8x8xf32>
    %266 = vector.extract_strided_slice %51 {offsets = [0, 15], sizes = [8, 1], strides = [1, 1]} : vector<8x32xf32> to vector<8x1xf32>
    %267 = vector.extract_strided_slice %52 {offsets = [15, 0], sizes = [1, 8], strides = [1, 1]} : vector<32x8xf32> to vector<1x8xf32>
    %268 = vector.broadcast %266 : vector<8x1xf32> to vector<8x8xf32>
    %269 = vector.broadcast %267 : vector<1x8xf32> to vector<8x8xf32>
    %270 = arith.addf %268, %269 : vector<8x8xf32>
    %cst_78 = arith.constant 0.000000e+00 : f32
    %271 = vector.broadcast %cst_78 : f32 to vector<8x8xf32>
    %272 = arith.cmpf oge, %270, %271 : vector<8x8xf32>
    %cst_79 = arith.constant 2.000000e-01 : f32
    %273 = vector.broadcast %cst_79 : f32 to vector<8x8xf32>
    %274 = arith.mulf %273, %270 : vector<8x8xf32>
    %275 = arith.select %272, %270, %274 : vector<8x8xi1>, vector<8x8xf32>
    %276 = vector.broadcast %17 : f32 to vector<8x8xf32>
    %277 = arith.mulf %276, %275 : vector<8x8xf32>
    %278 = arith.addf %265, %277 : vector<8x8xf32>
    %cst_80 = arith.constant 0.000000e+00 : bf16
    %279 = vector.broadcast %cst_80 : bf16 to vector<8x8xbf16>
    %280 = arith.cmpf ogt, %23, %279 : vector<8x8xbf16>
    %cst_81 = arith.constant -3.40282347E+38 : f32
    %281 = vector.broadcast %cst_81 : f32 to vector<8x8xf32>
    %282 = arith.select %280, %278, %281 : vector<8x8xi1>, vector<8x8xf32>
    %cst_82 = arith.constant dense<0xFF800000> : vector<8xf32>
    %283 = vector.multi_reduction <maximumf>, %282, %cst_82 [1] : vector<8x8xf32> to vector<8xf32>
    %284 = vector.shape_cast %283 : vector<8xf32> to vector<8x1xf32>
    %285 = vector.broadcast %284 : vector<8x1xf32> to vector<8x8xf32>
    %286 = arith.subf %282, %285 : vector<8x8xf32>
    %287 = math.exp %286 : vector<8x8xf32>
    %cst_83 = arith.constant dense<0.000000e+00> : vector<8xf32>
    %288 = vector.multi_reduction <add>, %287, %cst_83 [1] : vector<8x8xf32> to vector<8xf32>
    %289 = vector.shape_cast %288 : vector<8xf32> to vector<8x1xf32>
    %290 = vector.broadcast %289 : vector<8x1xf32> to vector<8x8xf32>
    %291 = arith.divf %287, %290 : vector<8x8xf32>
    %292 = vector.extract_strided_slice %51 {offsets = [0, 8], sizes = [8, 8], strides = [1, 1]} : vector<8x32xf32> to vector<8x8xf32>
    %cst_84 = arith.constant dense<0.000000e+00> : vector<8x8xf32>
    %293 = tpu.matmul %291, %292, %cst_84 {dimension_numbers = #tpu.dot_dimension_numbers<[1], [0], [0], [1], [0, 0, 1, 1], [], []>} : vector<8x8xf32>, vector<8x8xf32>, vector<8x8xf32> -> vector<8x8xf32>
    %c0_85 = arith.constant 0 : index
    %c8 = arith.constant 8 : index
    %294 = vector.load %arg16[%c0_85, %c8] : memref<8x32xf32, #tpu.memory_space<vmem>>, vector<8x8xf32>
    tpu.vector_store %arg16[%c0_85, %c8], %293 {strides = array<i32>} : memref<8x32xf32, #tpu.memory_space<vmem>>, vector<8x8xf32>,
    %cst_86 = arith.constant 0.000000e+00 : f32
    %295 = vector.broadcast %cst_86 : f32 to vector<8x8xf32>
    %296 = vector.extract_strided_slice %51 {offsets = [0, 16], sizes = [8, 1], strides = [1, 1]} : vector<8x32xf32> to vector<8x1xf32>
    %297 = vector.extract_strided_slice %52 {offsets = [16, 0], sizes = [1, 8], strides = [1, 1]} : vector<32x8xf32> to vector<1x8xf32>
    %298 = vector.broadcast %296 : vector<8x1xf32> to vector<8x8xf32>
    %299 = vector.broadcast %297 : vector<1x8xf32> to vector<8x8xf32>
    %300 = arith.addf %298, %299 : vector<8x8xf32>
    %cst_87 = arith.constant 0.000000e+00 : f32
    %301 = vector.broadcast %cst_87 : f32 to vector<8x8xf32>
    %302 = arith.cmpf oge, %300, %301 : vector<8x8xf32>
    %cst_88 = arith.constant 2.000000e-01 : f32
    %303 = vector.broadcast %cst_88 : f32 to vector<8x8xf32>
    %304 = arith.mulf %303, %300 : vector<8x8xf32>
    %305 = arith.select %302, %300, %304 : vector<8x8xi1>, vector<8x8xf32>
    %306 = vector.broadcast %10 : f32 to vector<8x8xf32>
    %307 = arith.mulf %306, %305 : vector<8x8xf32>
    %308 = arith.addf %295, %307 : vector<8x8xf32>
    %309 = vector.extract_strided_slice %51 {offsets = [0, 17], sizes = [8, 1], strides = [1, 1]} : vector<8x32xf32> to vector<8x1xf32>
    %310 = vector.extract_strided_slice %52 {offsets = [17, 0], sizes = [1, 8], strides = [1, 1]} : vector<32x8xf32> to vector<1x8xf32>
    %311 = vector.broadcast %309 : vector<8x1xf32> to vector<8x8xf32>
    %312 = vector.broadcast %310 : vector<1x8xf32> to vector<8x8xf32>
    %313 = arith.addf %311, %312 : vector<8x8xf32>
    %cst_89 = arith.constant 0.000000e+00 : f32
    %314 = vector.broadcast %cst_89 : f32 to vector<8x8xf32>
    %315 = arith.cmpf oge, %313, %314 : vector<8x8xf32>
    %cst_90 = arith.constant 2.000000e-01 : f32
    %316 = vector.broadcast %cst_90 : f32 to vector<8x8xf32>
    %317 = arith.mulf %316, %313 : vector<8x8xf32>
    %318 = arith.select %315, %313, %317 : vector<8x8xi1>, vector<8x8xf32>
    %319 = vector.broadcast %11 : f32 to vector<8x8xf32>
    %320 = arith.mulf %319, %318 : vector<8x8xf32>
    %321 = arith.addf %308, %320 : vector<8x8xf32>
    %322 = vector.extract_strided_slice %51 {offsets = [0, 18], sizes = [8, 1], strides = [1, 1]} : vector<8x32xf32> to vector<8x1xf32>
    %323 = vector.extract_strided_slice %52 {offsets = [18, 0], sizes = [1, 8], strides = [1, 1]} : vector<32x8xf32> to vector<1x8xf32>
    %324 = vector.broadcast %322 : vector<8x1xf32> to vector<8x8xf32>
    %325 = vector.broadcast %323 : vector<1x8xf32> to vector<8x8xf32>
    %326 = arith.addf %324, %325 : vector<8x8xf32>
    %cst_91 = arith.constant 0.000000e+00 : f32
    %327 = vector.broadcast %cst_91 : f32 to vector<8x8xf32>
    %328 = arith.cmpf oge, %326, %327 : vector<8x8xf32>
    %cst_92 = arith.constant 2.000000e-01 : f32
    %329 = vector.broadcast %cst_92 : f32 to vector<8x8xf32>
    %330 = arith.mulf %329, %326 : vector<8x8xf32>
    %331 = arith.select %328, %326, %330 : vector<8x8xi1>, vector<8x8xf32>
    %332 = vector.broadcast %12 : f32 to vector<8x8xf32>
    %333 = arith.mulf %332, %331 : vector<8x8xf32>
    %334 = arith.addf %321, %333 : vector<8x8xf32>
    %335 = vector.extract_strided_slice %51 {offsets = [0, 19], sizes = [8, 1], strides = [1, 1]} : vector<8x32xf32> to vector<8x1xf32>
    %336 = vector.extract_strided_slice %52 {offsets = [19, 0], sizes = [1, 8], strides = [1, 1]} : vector<32x8xf32> to vector<1x8xf32>
    %337 = vector.broadcast %335 : vector<8x1xf32> to vector<8x8xf32>
    %338 = vector.broadcast %336 : vector<1x8xf32> to vector<8x8xf32>
    %339 = arith.addf %337, %338 : vector<8x8xf32>
    %cst_93 = arith.constant 0.000000e+00 : f32
    %340 = vector.broadcast %cst_93 : f32 to vector<8x8xf32>
    %341 = arith.cmpf oge, %339, %340 : vector<8x8xf32>
    %cst_94 = arith.constant 2.000000e-01 : f32
    %342 = vector.broadcast %cst_94 : f32 to vector<8x8xf32>
    %343 = arith.mulf %342, %339 : vector<8x8xf32>
    %344 = arith.select %341, %339, %343 : vector<8x8xi1>, vector<8x8xf32>
    %345 = vector.broadcast %13 : f32 to vector<8x8xf32>
    %346 = arith.mulf %345, %344 : vector<8x8xf32>
    %347 = arith.addf %334, %346 : vector<8x8xf32>
    %348 = vector.extract_strided_slice %51 {offsets = [0, 20], sizes = [8, 1], strides = [1, 1]} : vector<8x32xf32> to vector<8x1xf32>
    %349 = vector.extract_strided_slice %52 {offsets = [20, 0], sizes = [1, 8], strides = [1, 1]} : vector<32x8xf32> to vector<1x8xf32>
    %350 = vector.broadcast %348 : vector<8x1xf32> to vector<8x8xf32>
    %351 = vector.broadcast %349 : vector<1x8xf32> to vector<8x8xf32>
    %352 = arith.addf %350, %351 : vector<8x8xf32>
    %cst_95 = arith.constant 0.000000e+00 : f32
    %353 = vector.broadcast %cst_95 : f32 to vector<8x8xf32>
    %354 = arith.cmpf oge, %352, %353 : vector<8x8xf32>
    %cst_96 = arith.constant 2.000000e-01 : f32
    %355 = vector.broadcast %cst_96 : f32 to vector<8x8xf32>
    %356 = arith.mulf %355, %352 : vector<8x8xf32>
    %357 = arith.select %354, %352, %356 : vector<8x8xi1>, vector<8x8xf32>
    %358 = vector.broadcast %14 : f32 to vector<8x8xf32>
    %359 = arith.mulf %358, %357 : vector<8x8xf32>
    %360 = arith.addf %347, %359 : vector<8x8xf32>
    %361 = vector.extract_strided_slice %51 {offsets = [0, 21], sizes = [8, 1], strides = [1, 1]} : vector<8x32xf32> to vector<8x1xf32>
    %362 = vector.extract_strided_slice %52 {offsets = [21, 0], sizes = [1, 8], strides = [1, 1]} : vector<32x8xf32> to vector<1x8xf32>
    %363 = vector.broadcast %361 : vector<8x1xf32> to vector<8x8xf32>
    %364 = vector.broadcast %362 : vector<1x8xf32> to vector<8x8xf32>
    %365 = arith.addf %363, %364 : vector<8x8xf32>
    %cst_97 = arith.constant 0.000000e+00 : f32
    %366 = vector.broadcast %cst_97 : f32 to vector<8x8xf32>
    %367 = arith.cmpf oge, %365, %366 : vector<8x8xf32>
    %cst_98 = arith.constant 2.000000e-01 : f32
    %368 = vector.broadcast %cst_98 : f32 to vector<8x8xf32>
    %369 = arith.mulf %368, %365 : vector<8x8xf32>
    %370 = arith.select %367, %365, %369 : vector<8x8xi1>, vector<8x8xf32>
    %371 = vector.broadcast %15 : f32 to vector<8x8xf32>
    %372 = arith.mulf %371, %370 : vector<8x8xf32>
    %373 = arith.addf %360, %372 : vector<8x8xf32>
    %374 = vector.extract_strided_slice %51 {offsets = [0, 22], sizes = [8, 1], strides = [1, 1]} : vector<8x32xf32> to vector<8x1xf32>
    %375 = vector.extract_strided_slice %52 {offsets = [22, 0], sizes = [1, 8], strides = [1, 1]} : vector<32x8xf32> to vector<1x8xf32>
    %376 = vector.broadcast %374 : vector<8x1xf32> to vector<8x8xf32>
    %377 = vector.broadcast %375 : vector<1x8xf32> to vector<8x8xf32>
    %378 = arith.addf %376, %377 : vector<8x8xf32>
    %cst_99 = arith.constant 0.000000e+00 : f32
    %379 = vector.broadcast %cst_99 : f32 to vector<8x8xf32>
    %380 = arith.cmpf oge, %378, %379 : vector<8x8xf32>
    %cst_100 = arith.constant 2.000000e-01 : f32
    %381 = vector.broadcast %cst_100 : f32 to vector<8x8xf32>
    %382 = arith.mulf %381, %378 : vector<8x8xf32>
    %383 = arith.select %380, %378, %382 : vector<8x8xi1>, vector<8x8xf32>
    %384 = vector.broadcast %16 : f32 to vector<8x8xf32>
    %385 = arith.mulf %384, %383 : vector<8x8xf32>
    %386 = arith.addf %373, %385 : vector<8x8xf32>
    %387 = vector.extract_strided_slice %51 {offsets = [0, 23], sizes = [8, 1], strides = [1, 1]} : vector<8x32xf32> to vector<8x1xf32>
    %388 = vector.extract_strided_slice %52 {offsets = [23, 0], sizes = [1, 8], strides = [1, 1]} : vector<32x8xf32> to vector<1x8xf32>
    %389 = vector.broadcast %387 : vector<8x1xf32> to vector<8x8xf32>
    %390 = vector.broadcast %388 : vector<1x8xf32> to vector<8x8xf32>
    %391 = arith.addf %389, %390 : vector<8x8xf32>
    %cst_101 = arith.constant 0.000000e+00 : f32
    %392 = vector.broadcast %cst_101 : f32 to vector<8x8xf32>
    %393 = arith.cmpf oge, %391, %392 : vector<8x8xf32>
    %cst_102 = arith.constant 2.000000e-01 : f32
    %394 = vector.broadcast %cst_102 : f32 to vector<8x8xf32>
    %395 = arith.mulf %394, %391 : vector<8x8xf32>
    %396 = arith.select %393, %391, %395 : vector<8x8xi1>, vector<8x8xf32>
    %397 = vector.broadcast %17 : f32 to vector<8x8xf32>
    %398 = arith.mulf %397, %396 : vector<8x8xf32>
    %399 = arith.addf %386, %398 : vector<8x8xf32>
    %cst_103 = arith.constant 0.000000e+00 : bf16
    %400 = vector.broadcast %cst_103 : bf16 to vector<8x8xbf16>
    %401 = arith.cmpf ogt, %23, %400 : vector<8x8xbf16>
    %cst_104 = arith.constant -3.40282347E+38 : f32
    %402 = vector.broadcast %cst_104 : f32 to vector<8x8xf32>
    %403 = arith.select %401, %399, %402 : vector<8x8xi1>, vector<8x8xf32>
    %cst_105 = arith.constant dense<0xFF800000> : vector<8xf32>
    %404 = vector.multi_reduction <maximumf>, %403, %cst_105 [1] : vector<8x8xf32> to vector<8xf32>
    %405 = vector.shape_cast %404 : vector<8xf32> to vector<8x1xf32>
    %406 = vector.broadcast %405 : vector<8x1xf32> to vector<8x8xf32>
    %407 = arith.subf %403, %406 : vector<8x8xf32>
    %408 = math.exp %407 : vector<8x8xf32>
    %cst_106 = arith.constant dense<0.000000e+00> : vector<8xf32>
    %409 = vector.multi_reduction <add>, %408, %cst_106 [1] : vector<8x8xf32> to vector<8xf32>
    %410 = vector.shape_cast %409 : vector<8xf32> to vector<8x1xf32>
    %411 = vector.broadcast %410 : vector<8x1xf32> to vector<8x8xf32>
    %412 = arith.divf %408, %411 : vector<8x8xf32>
    %413 = vector.extract_strided_slice %51 {offsets = [0, 16], sizes = [8, 8], strides = [1, 1]} : vector<8x32xf32> to vector<8x8xf32>
    %cst_107 = arith.constant dense<0.000000e+00> : vector<8x8xf32>
    %414 = tpu.matmul %412, %413, %cst_107 {dimension_numbers = #tpu.dot_dimension_numbers<[1], [0], [0], [1], [0, 0, 1, 1], [], []>} : vector<8x8xf32>, vector<8x8xf32>, vector<8x8xf32> -> vector<8x8xf32>
    %c0_108 = arith.constant 0 : index
    %c16 = arith.constant 16 : index
    %415 = vector.load %arg16[%c0_108, %c16] : memref<8x32xf32, #tpu.memory_space<vmem>>, vector<8x8xf32>
    tpu.vector_store %arg16[%c0_108, %c16], %414 {strides = array<i32>} : memref<8x32xf32, #tpu.memory_space<vmem>>, vector<8x8xf32>,
    %cst_109 = arith.constant 0.000000e+00 : f32
    %416 = vector.broadcast %cst_109 : f32 to vector<8x8xf32>
    %417 = vector.extract_strided_slice %51 {offsets = [0, 24], sizes = [8, 1], strides = [1, 1]} : vector<8x32xf32> to vector<8x1xf32>
    %418 = vector.extract_strided_slice %52 {offsets = [24, 0], sizes = [1, 8], strides = [1, 1]} : vector<32x8xf32> to vector<1x8xf32>
    %419 = vector.broadcast %417 : vector<8x1xf32> to vector<8x8xf32>
    %420 = vector.broadcast %418 : vector<1x8xf32> to vector<8x8xf32>
    %421 = arith.addf %419, %420 : vector<8x8xf32>
    %cst_110 = arith.constant 0.000000e+00 : f32
    %422 = vector.broadcast %cst_110 : f32 to vector<8x8xf32>
    %423 = arith.cmpf oge, %421, %422 : vector<8x8xf32>
    %cst_111 = arith.constant 2.000000e-01 : f32
    %424 = vector.broadcast %cst_111 : f32 to vector<8x8xf32>
    %425 = arith.mulf %424, %421 : vector<8x8xf32>
    %426 = arith.select %423, %421, %425 : vector<8x8xi1>, vector<8x8xf32>
    %427 = vector.broadcast %10 : f32 to vector<8x8xf32>
    %428 = arith.mulf %427, %426 : vector<8x8xf32>
    %429 = arith.addf %416, %428 : vector<8x8xf32>
    %430 = vector.extract_strided_slice %51 {offsets = [0, 25], sizes = [8, 1], strides = [1, 1]} : vector<8x32xf32> to vector<8x1xf32>
    %431 = vector.extract_strided_slice %52 {offsets = [25, 0], sizes = [1, 8], strides = [1, 1]} : vector<32x8xf32> to vector<1x8xf32>
    %432 = vector.broadcast %430 : vector<8x1xf32> to vector<8x8xf32>
    %433 = vector.broadcast %431 : vector<1x8xf32> to vector<8x8xf32>
    %434 = arith.addf %432, %433 : vector<8x8xf32>
    %cst_112 = arith.constant 0.000000e+00 : f32
    %435 = vector.broadcast %cst_112 : f32 to vector<8x8xf32>
    %436 = arith.cmpf oge, %434, %435 : vector<8x8xf32>
    %cst_113 = arith.constant 2.000000e-01 : f32
    %437 = vector.broadcast %cst_113 : f32 to vector<8x8xf32>
    %438 = arith.mulf %437, %434 : vector<8x8xf32>
    %439 = arith.select %436, %434, %438 : vector<8x8xi1>, vector<8x8xf32>
    %440 = vector.broadcast %11 : f32 to vector<8x8xf32>
    %441 = arith.mulf %440, %439 : vector<8x8xf32>
    %442 = arith.addf %429, %441 : vector<8x8xf32>
    %443 = vector.extract_strided_slice %51 {offsets = [0, 26], sizes = [8, 1], strides = [1, 1]} : vector<8x32xf32> to vector<8x1xf32>
    %444 = vector.extract_strided_slice %52 {offsets = [26, 0], sizes = [1, 8], strides = [1, 1]} : vector<32x8xf32> to vector<1x8xf32>
    %445 = vector.broadcast %443 : vector<8x1xf32> to vector<8x8xf32>
    %446 = vector.broadcast %444 : vector<1x8xf32> to vector<8x8xf32>
    %447 = arith.addf %445, %446 : vector<8x8xf32>
    %cst_114 = arith.constant 0.000000e+00 : f32
    %448 = vector.broadcast %cst_114 : f32 to vector<8x8xf32>
    %449 = arith.cmpf oge, %447, %448 : vector<8x8xf32>
    %cst_115 = arith.constant 2.000000e-01 : f32
    %450 = vector.broadcast %cst_115 : f32 to vector<8x8xf32>
    %451 = arith.mulf %450, %447 : vector<8x8xf32>
    %452 = arith.select %449, %447, %451 : vector<8x8xi1>, vector<8x8xf32>
    %453 = vector.broadcast %12 : f32 to vector<8x8xf32>
    %454 = arith.mulf %453, %452 : vector<8x8xf32>
    %455 = arith.addf %442, %454 : vector<8x8xf32>
    %456 = vector.extract_strided_slice %51 {offsets = [0, 27], sizes = [8, 1], strides = [1, 1]} : vector<8x32xf32> to vector<8x1xf32>
    %457 = vector.extract_strided_slice %52 {offsets = [27, 0], sizes = [1, 8], strides = [1, 1]} : vector<32x8xf32> to vector<1x8xf32>
    %458 = vector.broadcast %456 : vector<8x1xf32> to vector<8x8xf32>
    %459 = vector.broadcast %457 : vector<1x8xf32> to vector<8x8xf32>
    %460 = arith.addf %458, %459 : vector<8x8xf32>
    %cst_116 = arith.constant 0.000000e+00 : f32
    %461 = vector.broadcast %cst_116 : f32 to vector<8x8xf32>
    %462 = arith.cmpf oge, %460, %461 : vector<8x8xf32>
    %cst_117 = arith.constant 2.000000e-01 : f32
    %463 = vector.broadcast %cst_117 : f32 to vector<8x8xf32>
    %464 = arith.mulf %463, %460 : vector<8x8xf32>
    %465 = arith.select %462, %460, %464 : vector<8x8xi1>, vector<8x8xf32>
    %466 = vector.broadcast %13 : f32 to vector<8x8xf32>
    %467 = arith.mulf %466, %465 : vector<8x8xf32>
    %468 = arith.addf %455, %467 : vector<8x8xf32>
    %469 = vector.extract_strided_slice %51 {offsets = [0, 28], sizes = [8, 1], strides = [1, 1]} : vector<8x32xf32> to vector<8x1xf32>
    %470 = vector.extract_strided_slice %52 {offsets = [28, 0], sizes = [1, 8], strides = [1, 1]} : vector<32x8xf32> to vector<1x8xf32>
    %471 = vector.broadcast %469 : vector<8x1xf32> to vector<8x8xf32>
    %472 = vector.broadcast %470 : vector<1x8xf32> to vector<8x8xf32>
    %473 = arith.addf %471, %472 : vector<8x8xf32>
    %cst_118 = arith.constant 0.000000e+00 : f32
    %474 = vector.broadcast %cst_118 : f32 to vector<8x8xf32>
    %475 = arith.cmpf oge, %473, %474 : vector<8x8xf32>
    %cst_119 = arith.constant 2.000000e-01 : f32
    %476 = vector.broadcast %cst_119 : f32 to vector<8x8xf32>
    %477 = arith.mulf %476, %473 : vector<8x8xf32>
    %478 = arith.select %475, %473, %477 : vector<8x8xi1>, vector<8x8xf32>
    %479 = vector.broadcast %14 : f32 to vector<8x8xf32>
    %480 = arith.mulf %479, %478 : vector<8x8xf32>
    %481 = arith.addf %468, %480 : vector<8x8xf32>
    %482 = vector.extract_strided_slice %51 {offsets = [0, 29], sizes = [8, 1], strides = [1, 1]} : vector<8x32xf32> to vector<8x1xf32>
    %483 = vector.extract_strided_slice %52 {offsets = [29, 0], sizes = [1, 8], strides = [1, 1]} : vector<32x8xf32> to vector<1x8xf32>
    %484 = vector.broadcast %482 : vector<8x1xf32> to vector<8x8xf32>
    %485 = vector.broadcast %483 : vector<1x8xf32> to vector<8x8xf32>
    %486 = arith.addf %484, %485 : vector<8x8xf32>
    %cst_120 = arith.constant 0.000000e+00 : f32
    %487 = vector.broadcast %cst_120 : f32 to vector<8x8xf32>
    %488 = arith.cmpf oge, %486, %487 : vector<8x8xf32>
    %cst_121 = arith.constant 2.000000e-01 : f32
    %489 = vector.broadcast %cst_121 : f32 to vector<8x8xf32>
    %490 = arith.mulf %489, %486 : vector<8x8xf32>
    %491 = arith.select %488, %486, %490 : vector<8x8xi1>, vector<8x8xf32>
    %492 = vector.broadcast %15 : f32 to vector<8x8xf32>
    %493 = arith.mulf %492, %491 : vector<8x8xf32>
    %494 = arith.addf %481, %493 : vector<8x8xf32>
    %495 = vector.extract_strided_slice %51 {offsets = [0, 30], sizes = [8, 1], strides = [1, 1]} : vector<8x32xf32> to vector<8x1xf32>
    %496 = vector.extract_strided_slice %52 {offsets = [30, 0], sizes = [1, 8], strides = [1, 1]} : vector<32x8xf32> to vector<1x8xf32>
    %497 = vector.broadcast %495 : vector<8x1xf32> to vector<8x8xf32>
    %498 = vector.broadcast %496 : vector<1x8xf32> to vector<8x8xf32>
    %499 = arith.addf %497, %498 : vector<8x8xf32>
    %cst_122 = arith.constant 0.000000e+00 : f32
    %500 = vector.broadcast %cst_122 : f32 to vector<8x8xf32>
    %501 = arith.cmpf oge, %499, %500 : vector<8x8xf32>
    %cst_123 = arith.constant 2.000000e-01 : f32
    %502 = vector.broadcast %cst_123 : f32 to vector<8x8xf32>
    %503 = arith.mulf %502, %499 : vector<8x8xf32>
    %504 = arith.select %501, %499, %503 : vector<8x8xi1>, vector<8x8xf32>
    %505 = vector.broadcast %16 : f32 to vector<8x8xf32>
    %506 = arith.mulf %505, %504 : vector<8x8xf32>
    %507 = arith.addf %494, %506 : vector<8x8xf32>
    %508 = vector.extract_strided_slice %51 {offsets = [0, 31], sizes = [8, 1], strides = [1, 1]} : vector<8x32xf32> to vector<8x1xf32>
    %509 = vector.extract_strided_slice %52 {offsets = [31, 0], sizes = [1, 8], strides = [1, 1]} : vector<32x8xf32> to vector<1x8xf32>
    %510 = vector.broadcast %508 : vector<8x1xf32> to vector<8x8xf32>
    %511 = vector.broadcast %509 : vector<1x8xf32> to vector<8x8xf32>
    %512 = arith.addf %510, %511 : vector<8x8xf32>
    %cst_124 = arith.constant 0.000000e+00 : f32
    %513 = vector.broadcast %cst_124 : f32 to vector<8x8xf32>
    %514 = arith.cmpf oge, %512, %513 : vector<8x8xf32>
    %cst_125 = arith.constant 2.000000e-01 : f32
    %515 = vector.broadcast %cst_125 : f32 to vector<8x8xf32>
    %516 = arith.mulf %515, %512 : vector<8x8xf32>
    %517 = arith.select %514, %512, %516 : vector<8x8xi1>, vector<8x8xf32>
    %518 = vector.broadcast %17 : f32 to vector<8x8xf32>
    %519 = arith.mulf %518, %517 : vector<8x8xf32>
    %520 = arith.addf %507, %519 : vector<8x8xf32>
    %cst_126 = arith.constant 0.000000e+00 : bf16
    %521 = vector.broadcast %cst_126 : bf16 to vector<8x8xbf16>
    %522 = arith.cmpf ogt, %23, %521 : vector<8x8xbf16>
    %cst_127 = arith.constant -3.40282347E+38 : f32
    %523 = vector.broadcast %cst_127 : f32 to vector<8x8xf32>
    %524 = arith.select %522, %520, %523 : vector<8x8xi1>, vector<8x8xf32>
    %cst_128 = arith.constant dense<0xFF800000> : vector<8xf32>
    %525 = vector.multi_reduction <maximumf>, %524, %cst_128 [1] : vector<8x8xf32> to vector<8xf32>
    %526 = vector.shape_cast %525 : vector<8xf32> to vector<8x1xf32>
    %527 = vector.broadcast %526 : vector<8x1xf32> to vector<8x8xf32>
    %528 = arith.subf %524, %527 : vector<8x8xf32>
    %529 = math.exp %528 : vector<8x8xf32>
    %cst_129 = arith.constant dense<0.000000e+00> : vector<8xf32>
    %530 = vector.multi_reduction <add>, %529, %cst_129 [1] : vector<8x8xf32> to vector<8xf32>
    %531 = vector.shape_cast %530 : vector<8xf32> to vector<8x1xf32>
    %532 = vector.broadcast %531 : vector<8x1xf32> to vector<8x8xf32>
    %533 = arith.divf %529, %532 : vector<8x8xf32>
    %534 = vector.extract_strided_slice %51 {offsets = [0, 24], sizes = [8, 8], strides = [1, 1]} : vector<8x32xf32> to vector<8x8xf32>
    %cst_130 = arith.constant dense<0.000000e+00> : vector<8x8xf32>
    %535 = tpu.matmul %533, %534, %cst_130 {dimension_numbers = #tpu.dot_dimension_numbers<[1], [0], [0], [1], [0, 0, 1, 1], [], []>} : vector<8x8xf32>, vector<8x8xf32>, vector<8x8xf32> -> vector<8x8xf32>
    %c0_131 = arith.constant 0 : index
    %c24 = arith.constant 24 : index
    %536 = vector.load %arg16[%c0_131, %c24] : memref<8x32xf32, #tpu.memory_space<vmem>>, vector<8x8xf32>
    tpu.vector_store %arg16[%c0_131, %c24], %535 {strides = array<i32>} : memref<8x32xf32, #tpu.memory_space<vmem>>, vector<8x8xf32>,
    %c0_132 = arith.constant 0 : index
    %c0_133 = arith.constant 0 : index
    %537 = vector.load %arg16[%c0_132, %c0_133] : memref<8x32xf32, #tpu.memory_space<vmem>>, vector<8x32xf32>
    %cst_134 = arith.constant dense<0.000000e+00> : vector<8x32xf32>
    %538 = tpu.matmul %537, %1, %cst_134 {dimension_numbers = #tpu.dot_dimension_numbers<[1], [0], [0], [1], [0, 0, 1, 1], [], []>} : vector<8x32xf32>, vector<32x32xf32>, vector<8x32xf32> -> vector<8x32xf32>
    %539 = arith.addf %538, %48 : vector<8x32xf32>
    %cst_135 = arith.constant dense<0.000000e+00> : vector<8xf32>
    %540 = vector.multi_reduction <add>, %539, %cst_135 [1] : vector<8x32xf32> to vector<8xf32>
    %541 = vector.shape_cast %540 : vector<8xf32> to vector<8x1xf32>
    %cst_136 = arith.constant 3.200000e+01 : f32
    %542 = vector.broadcast %cst_136 : f32 to vector<8x1xf32>
    %543 = arith.divf %541, %542 : vector<8x1xf32>
    %544 = vector.broadcast %543 : vector<8x1xf32> to vector<8x32xf32>
    %545 = arith.subf %539, %544 : vector<8x32xf32>
    %546 = arith.mulf %545, %545 : vector<8x32xf32>
    %cst_137 = arith.constant dense<0.000000e+00> : vector<8xf32>
    %547 = vector.multi_reduction <add>, %546, %cst_137 [1] : vector<8x32xf32> to vector<8xf32>
    %548 = vector.shape_cast %547 : vector<8xf32> to vector<8x1xf32>
    %cst_138 = arith.constant 3.200000e+01 : f32
    %549 = vector.broadcast %cst_138 : f32 to vector<8x1xf32>
    %550 = arith.divf %548, %549 : vector<8x1xf32>
    %551 = vector.broadcast %543 : vector<8x1xf32> to vector<8x32xf32>
    %552 = arith.subf %539, %551 : vector<8x32xf32>
    %cst_139 = arith.constant 9.99999974E-6 : f32
    %553 = vector.broadcast %cst_139 : f32 to vector<8x1xf32>
    %554 = arith.addf %550, %553 : vector<8x1xf32>
    %555 = math.rsqrt %554 : vector<8x1xf32>
    %556 = vector.broadcast %555 : vector<8x1xf32> to vector<8x32xf32>
    %557 = arith.mulf %552, %556 : vector<8x32xf32>
    %558 = vector.broadcast %4 : vector<1x32xf32> to vector<8x32xf32>
    %559 = arith.mulf %557, %558 : vector<8x32xf32>
    %560 = vector.broadcast %5 : vector<1x32xf32> to vector<8x32xf32>
    %561 = arith.addf %559, %560 : vector<8x32xf32>
    %cst_140 = arith.constant dense<0.000000e+00> : vector<8x128xf32>
    %562 = tpu.matmul %561, %6, %cst_140 {dimension_numbers = #tpu.dot_dimension_numbers<[1], [0], [0], [1], [0, 0, 1, 1], [], []>} : vector<8x32xf32>, vector<32x128xf32>, vector<8x128xf32> -> vector<8x128xf32>
    %563 = vector.broadcast %7 : vector<1x128xf32> to vector<8x128xf32>
    %564 = arith.addf %562, %563 : vector<8x128xf32>
    %cst_141 = arith.constant 0.000000e+00 : f32
    %565 = vector.broadcast %cst_141 : f32 to vector<8x128xf32>
    %566 = arith.maximumf %564, %565 : vector<8x128xf32>
    %cst_142 = arith.constant dense<0.000000e+00> : vector<8x32xf32>
    %567 = tpu.matmul %566, %8, %cst_142 {dimension_numbers = #tpu.dot_dimension_numbers<[1], [0], [0], [1], [0, 0, 1, 1], [], []>} : vector<8x128xf32>, vector<128x32xf32>, vector<8x32xf32> -> vector<8x32xf32>
    %568 = vector.broadcast %9 : vector<1x32xf32> to vector<8x32xf32>
    %569 = arith.addf %567, %568 : vector<8x32xf32>
    %cst_143 = arith.constant 0.000000e+00 : f32
    %570 = vector.broadcast %cst_143 : f32 to vector<8x1xf32>
    %571 = arith.cmpf ogt, %26, %570 : vector<8x1xf32>
    %cst_144 = arith.constant 0.000000e+00 : f32
    %572 = vector.shape_cast %571 : vector<8x1xi1> to vector<8x1xi1>
    %573 = vector.broadcast %572 : vector<8x1xi1> to vector<8x32xi1>
    %574 = vector.broadcast %cst_144 : f32 to vector<8x32xf32>
    %575 = arith.select %573, %574, %569 : vector<8x32xi1>, vector<8x32xf32>
    %576 = arith.addf %575, %561 : vector<8x32xf32>
    %577 = arith.index_cast %c0_i32 : i32 to index
    %c0_145 = arith.constant 0 : index
    %c0_146 = arith.constant 0 : index
    %578 = vector.load %arg15[%577, %c0_145, %c0_146] : memref<1x8x32xf32, #tpu.memory_space<vmem>>, vector<1x8x32xf32>
    %579 = vector.shape_cast %578 : vector<1x8x32xf32> to vector<8x32xf32>
    %580 = vector.shape_cast %576 : vector<8x32xf32> to vector<1x8x32xf32>
    tpu.vector_store %arg15[%577, %c0_145, %c0_146], %580 {strides = array<i32>} : memref<1x8x32xf32, #tpu.memory_space<vmem>>, vector<1x8x32xf32>,
    %c1_i32 = arith.constant 1 : i32
    return
  }
  func.func @transform_0(%arg0: i32) -> (i32, i32, i32) {
    %c0_i32 = arith.constant 0 : i32
    %c0_i32_0 = arith.constant 0 : i32
    %c0_i32_1 = arith.constant 0 : i32
    return %arg0, %c0_i32, %c0_i32_0 : i32, i32, i32
  }
  func.func @transform_1(%arg0: i32) -> (i32, i32, i32) {
    %c0_i32 = arith.constant 0 : i32
    %c0_i32_0 = arith.constant 0 : i32
    %c0_i32_1 = arith.constant 0 : i32
    return %arg0, %c0_i32, %c0_i32_0 : i32, i32, i32
  }
  func.func @transform_2(%arg0: i32) -> (i32, i32, i32) {
    %c0_i32 = arith.constant 0 : i32
    %c0_i32_0 = arith.constant 0 : i32
    %c0_i32_1 = arith.constant 0 : i32
    return %arg0, %c0_i32, %c0_i32_0 : i32, i32, i32
  }
  func.func @transform_3(%arg0: i32) -> (i32, i32) {
    %c0_i32 = arith.constant 0 : i32
    %c0_i32_0 = arith.constant 0 : i32
    %c0_i32_1 = arith.constant 0 : i32
    return %c0_i32, %c0_i32_0 : i32, i32
  }
  func.func @transform_4(%arg0: i32) -> (i32, i32) {
    %c0_i32 = arith.constant 0 : i32
    %c0_i32_0 = arith.constant 0 : i32
    %c0_i32_1 = arith.constant 0 : i32
    return %c0_i32, %c0_i32_0 : i32, i32
  }
  func.func @transform_5(%arg0: i32) -> (i32, i32) {
    %c0_i32 = arith.constant 0 : i32
    %c0_i32_0 = arith.constant 0 : i32
    %c0_i32_1 = arith.constant 0 : i32
    return %c0_i32, %c0_i32_0 : i32, i32
  }
  func.func @transform_6(%arg0: i32) -> (i32, i32) {
    %c0_i32 = arith.constant 0 : i32
    %c0_i32_0 = arith.constant 0 : i32
    %c0_i32_1 = arith.constant 0 : i32
    return %c0_i32, %c0_i32_0 : i32, i32
  }
  func.func @transform_7(%arg0: i32) -> (i32, i32) {
    %c0_i32 = arith.constant 0 : i32
    %c0_i32_0 = arith.constant 0 : i32
    %c0_i32_1 = arith.constant 0 : i32
    return %c0_i32, %c0_i32_0 : i32, i32
  }
  func.func @transform_8(%arg0: i32) -> (i32, i32) {
    %c0_i32 = arith.constant 0 : i32
    %c0_i32_0 = arith.constant 0 : i32
    %c0_i32_1 = arith.constant 0 : i32
    return %c0_i32, %c0_i32_0 : i32, i32
  }
  func.func @transform_9(%arg0: i32) -> (i32, i32) {
    %c0_i32 = arith.constant 0 : i32
    %c0_i32_0 = arith.constant 0 : i32
    %c0_i32_1 = arith.constant 0 : i32
    return %c0_i32, %c0_i32_0 : i32, i32
  }
  func.func @transform_10(%arg0: i32) -> (i32, i32) {
    %c0_i32 = arith.constant 0 : i32
    %c0_i32_0 = arith.constant 0 : i32
    %c0_i32_1 = arith.constant 0 : i32
    return %c0_i32, %c0_i32_0 : i32, i32
  }
  func.func @transform_11(%arg0: i32) -> (i32, i32) {
    %c0_i32 = arith.constant 0 : i32
    %c0_i32_0 = arith.constant 0 : i32
    %c0_i32_1 = arith.constant 0 : i32
    return %c0_i32, %c0_i32_0 : i32, i32
  }
  func.func @transform_12(%arg0: i32) -> (i32, i32) {
    %c0_i32 = arith.constant 0 : i32
    %c0_i32_0 = arith.constant 0 : i32
    %c0_i32_1 = arith.constant 0 : i32
    return %c0_i32, %c0_i32_0 : i32, i32
  }
  func.func @transform_13(%arg0: i32) -> (i32, i32) {
    %c0_i32 = arith.constant 0 : i32
    %c0_i32_0 = arith.constant 0 : i32
    %c0_i32_1 = arith.constant 0 : i32
    return %c0_i32, %c0_i32_0 : i32, i32
  }
  func.func @transform_14(%arg0: i32) -> (i32, i32, i32) {
    %c0_i32 = arith.constant 0 : i32
    %c0_i32_0 = arith.constant 0 : i32
    %c0_i32_1 = arith.constant 0 : i32
    return %arg0, %c0_i32, %c0_i32_0 : i32, i32, i32
  }
}

</mosaic_0001>

<bundles_post_ra>
// kernel: tpu_custom_call.1
= control target key start
LH: loop header
LB: loop body
LE: loop exit
PB: predicated region body
PF: predicated region fallthrough
CT: control target
= control target key end

     0   :  { %s2304_s0 = inlined_call_operand.vmem [shape: f32[2,8,32], index: 0, kind: input, shape index: {}]   ;;  %s2305_s1 = inlined_call_operand.vmem [shape: bf16[2,8,8], index: 1, kind: input, shape index: {}]   ;;  %s2306_s2 = inlined_call_operand.vmem [shape: f32[2,8,1], index: 2, kind: input, shape index: {}]   ;;  %s2307_s3 = inlined_call_operand.vmem [shape: f32[1,8], index: 3, kind: input, shape index: {}]   ;;  %s2308_s4 = inlined_call_operand.vmem [shape: f32[32,64], index: 4, kind: input, shape index: {}]   ;;  %s2309_s5 = inlined_call_operand.vmem [shape: f32[32,32], index: 5, kind: input, shape index: {}]   ;;  %s2310_s6 = inlined_call_operand.vmem [shape: f32[1,32], index: 6, kind: input, shape index: {}]   ;;  %s2311_s7 = inlined_call_operand.vmem [shape: f32[1,32], index: 7, kind: input, shape index: {}]   ;;  %s2312_s8 = inlined_call_operand.vmem [shape: f32[1,32], index: 8, kind: input, shape index: {}]   ;;  %s2313_s9 = inlined_call_operand.vmem [shape: f32[1,32], index: 9, kind: input, shape index: {}]   ;;  %s2314_s10 = inlined_call_operand.vmem [shape: f32[32,128], index: 10, kind: input, shape index: {}]   ;;  %s2315_s11 = inlined_call_operand.vmem [shape: f32[1,128], index: 11, kind: input, shape index: {}]   ;;  %s2316_s12 = inlined_call_operand.vmem [shape: f32[128,32], index: 12, kind: input, shape index: {}]   ;;  %s2317_s13 = inlined_call_operand.vmem [shape: f32[1,32], index: 13, kind: input, shape index: {}]   ;;  %s2318_s14 = inlined_call_operand.hbm [shape: f32[2,8,32], index: 14, kind: output, shape index: {}]  }
   0x1   :  { %2320 = sst [smem:[#allocation10_spill]] %s2304_s0 }
   0x2   :  { %2321 = sst [smem:[#allocation11_spill]] %s2307_s3 }
   0x3   :  { %2322 = sst [smem:[#allocation12_spill]] %s2308_s4 }
   0x4   :  { %2323 = sst [smem:[#allocation13_spill]] %s2310_s6 }
   0x5   :  { %2324 = sst [smem:[#allocation14_spill]] %s2311_s7 }
   0x6   :  { %19 = vsyncpa [#allocation5], 0 }
   0x7   :  { %20 = vsyncpa [#allocation4], 0 }
   0x8   :  { %22 = vsyncpa [#allocation4 + $0x1], 0  ;;  %s1841_s29 = smov 0   ;;  %s1843_s30 = smov 0  }
   0x9   :  { %s1845_s15 = smov 0   ;;  %s1847_s16 = smov 0  }
   0xa LB: > { %s1862_s17 = sadd.s32 4294967295, %s1722_s16   ;;  %s1460_s18 = sadd.s32 4294967294, %s1722_s16   ;;  %s1722_s16 = sphi %s1847_s16, %s2340_s16   ;;  %s1718_s15 = sphi %s1845_s15, %s2339_s15   ;;  %s1714_s30 = sphi %s1843_s30, %s2338_s30   ;;  %s1710_s29 = sphi %s1841_s29, %s2337_s29  }
   0xb   : > { %s1866_s19 = sadd.s32 1, %s1722_s16   ;;  %s344_s20 = sadd.s32 1, %s1718_s15 }
   0xc   : > { %s341_s21 = ssub.s32 %s1722_s16, %s1866_s19  ;;  %p354_p0 = scmp.ne.s32.totalorder %s1718_s15, %s1714_s30 }
   0xd   : > { %p342_p1 = scmp.eq.s32.totalorder %s341_s21, 0  ;;  %p355_p2 = scmp.eq.s32.totalorder %s1862_s17, 1 }
   0xe   : > { %p360_p3 = scmp.ne.s32.totalorder %s1714_s30, %s1710_s29  ;;  %p361_p4 = scmp.eq.s32.totalorder %s1460_s18, 1 }
   0xf   : > { %s1877_s22 = scalar_select %p342_p1, %s1718_s15, %s344_s20  }
  0x10   : > { %p1879_p5 = por %p355_p2, %p354_p0  ;;  %p1883_p6 = por %p361_p4, %p360_p3 }
  0x11   : > { %2325 = sst [smem:[#allocation9_spill]] %s1877_s22  ;;  %p1461_p7 = scmp.ge.s32.totalorder %s1722_s16, 1 }
  0x12   : > { %p368_p8 = scmp.lt.s32.totalorder %s1722_s16, 3  ;;  %p1502_p9 = scmp.eq.s32.totalorder %s1862_s17, 0 }
  0x13   : > { %s2328_s3 = sld [smem:[#allocation11_spill]]  ;;  %s1724_s28 = smov [#allocation3]  }
  0x14   : > { %p369_p10 = pnand %p1461_p7, %p368_p8 }
  0x16   : > { %p1494_p11 = pneg %p369_p10  ;;  %444 = sbr.rel (%p369_p10) target bundleno = 1975 (0x7b7), region = 76 }
  0x18   : > { %p1495_p12 = pnand %p1502_p9, %p1494_p11 }
  0x19   : > { %s380_s27 = sshll.u32 %s2328_s3, 4  ;;  %s381_s27 = int_to_ptr.vmem [resolvable:$true] %s380_s27 }
  0x1a   : > { %1497 = dma.vmem_to_smem (!%p1495_p12), %s381_s27, 16, %s1724_s28, [#allocation5]  }
  0x1b   : > { %1701 = dma.done.wait (%p1502_p9), [#allocation5], 16  }
  0x1c   : > { %1703 = vsyncadd (%p1502_p9), [#allocation5], 4294967280 }
  0x1d   : > { %451 = sfence }
  0x1e   : > { %p499_p13 = scmp.lt.s32.totalorder %s1862_s17, 1  ;;  %vm556_vm0 = vcmask 261120   ;;  %s2329_s0 = sld [smem:[#allocation10_spill]]  ;;  %v1725_v2 = vmov 32.0   ;;  %v1726_v18 = vmov 48   ;;  %v1727_v19 = vmov 40  }
  0x1f   : > { %1619 = vrcp.f32 %v1725_v2  ;;  %s2330_s4 = sld [smem:[#allocation12_spill]]  ;;  %1584 = vset.pattern.permute.xlu0 %v1726_v18  ;;  %1582 = vset.pattern.permute.xlu2 %v1727_v19  ;;  %v1728_v20 = vmov 32   ;;  %v1729_v37 = vmov 37   ;;  %v1730_v38 = vmov 41  }
  0x20   : > { %s1895_s18 = scalar_select %p499_p13, %s1862_s17, 1  ;;  %1580 = vset.pattern.permute.xlu1 %v1728_v20  ;;  %v1731_v39 = vmov 33   ;;  %v1732_v40 = vmov 38   ;;  %v1733_v41 = vmov 34   ;;  %v1734_v42 = vmov 49  }
  0x21   : > { %s2331_s6 = sld [smem:[#allocation13_spill]]  ;;  %v1735_v43 = vmov 47   ;;  %v1736_v44 = vmov 50   ;;  %v1737_v45 = vmov 42   ;;  %v1738_v46 = vmov 61  }
  0x22   : > { %s2319_s20 = sshll.u32 %s1895_s18, 3  ;;  %s2332_s7 = sld [smem:[#allocation14_spill]]  ;;  %v1739_v47 = vmov 43   ;;  %v1740_v48 = vmov 35   ;;  %v1741_v49 = vmov 36   ;;  %v1742_v50 = vmov 51  }
  0x23   : > { %v1743_v51 = vmov 52   ;;  %v1744_v52 = vmov 44   ;;  %v1745_v53 = vmov 56   ;;  %v1746_v54 = vmov 45   ;;  %s545_s28 = sld [smem:[#allocation3]] }
  0x24   : > { %s502_s26 = scalar_lea.vmem %s2329_s0, %s2319_s20  ;;  %v1747_v55 = vmov 53   ;;  %v1748_v56 = vmov 57   ;;  %v1749_v57 = vmov 58   ;;  %v1750_v58 = vmov 46   ;;  %s1470_s21 = sld [smem:[#allocation3 + $0x1]] }
  0x25   : > { %v553_v0 = vld [vmem:[%s502_s26] sm:$0xff]  ;;  %v1620_v3 = vpop.eup %1619  ;;  %v514_v14 = vld [vmem:[%s2330_s4 + $0x18] sm:$0xff]  ;;  %v513_v15 = vld [vmem:[%s2330_s4 + $0x10] sm:$0xff]  ;;  %v1751_v59 = vmov 39   ;;  %v1752_v60 = vmov 54   ;;  %v1753_v61 = vmov 55  }
  0x26   : > { %v557_v1 = vsel %vm556_vm0, %v553_v0, 0.0  ;;  %v561_v4 = vmul.f32 32.0, %v1620_v3  ;;  %vm565_vm1 = vweird.f32 %v1620_v3  ;;  %609 = vmatpush.msra.mxu1 %v514_v14  ;;  %v512_v16 = vld [vmem:[%s2330_s4 + $0x8] sm:$0xff]  ;;  %v511_v17 = vld [vmem:[%s2330_s4] sm:$0xff]  ;;  %v1754_v62 = vmov 59   ;;  %s1471_s25 = sld [smem:[#allocation3 + $0x2]] }
  0x27   : > { %558 = vadd.xlane.f32.xlu0 %v557_v1  ;;  %v1613_v30 = vld [vmem:[%s2331_s6] ss:$0 sm:$0xff]  ;;  %v1755_v63 = vmov 60   ;;  %v1757_v1 = vmov 63   ;;  %s1472_s26 = sld [smem:[#allocation3 + $0x3]]  ;;  %s1468_s20 = sshll.u32 %s1895_s18, 2 }
  0x28   : > { %v562_v5 = vsub.f32 1.0, %v561_v4  ;;  %610 = vmatpush.msra.mxu1 %v513_v15  ;;  %v1614_v33 = vld [vmem:[%s2332_s7] ss:$0 sm:$0xff]  ;;  %s1473_s0 = sld [smem:[#allocation3 + $0x4]]  ;;  %s506_s22 = scalar_lea.vmem %s2305_s1, %s1468_s20 }
  0x29   : > { %s1474_s3 = sld [smem:[#allocation3 + $0x5]]  ;;  %s1759_s6 = smov 88  }
  0x2a   : > { %v563_v6 = vmul.f32 %v1620_v3, %v562_v5  ;;  %611 = vmatpush.msra.mxu1 %v512_v16  ;;  %s1475_s27 = sld [smem:[#allocation3 + $0x6]]  ;;  %s1760_s7 = smov 80  }
  0x2b   : > { %s1476_s4 = sld [smem:[#allocation3 + $0x7]] }
  0x2c   : > { %v564_v7 = vadd.f32 %v1620_v3, %v563_v6  ;;  %612 = vmatpush.msra.mxu1 %v511_v17 }
  0x2e   : > { %v1904_v8 = vsel %vm565_vm1, %v1620_v3, %v564_v7  ;;  %vm749_vm1 = vcmask 64512  }
  0x9a   : > { %v559_v9 = vpop.xlane.xlu0 %558 }
  0x9b   : > { %v567_v10 = vmul.f32 %v1904_v8, %v559_v9 }
  0x9d   : > { %v568_v11 = vsub.f32 %v553_v0, %v567_v10  ;;  %v1756_v0 = vmov 62  }
  0x9f   : > { %v569_v12 = vmul.f32 %v568_v11, %v568_v11 }
  0xa1   : > { %v570_v13 = vsel %vm556_vm0, %v569_v12, 0.0 }
  0xa2   : > { %571 = vadd.xlane.f32.xlu0 %v570_v13 }
 0x115   : > { %v572_v21 = vpop.xlane.xlu0 %571 }
 0x116   : > { %v573_v22 = vmul.f32 %v572_v21, %v1904_v8 }
 0x118   : > { %v574_v23 = vadd.f32 1e-05, %v573_v22 }
 0x11a   : > { %1621 = vrsqrt.f32 %v574_v23  ;;  %vm581_vm3 = vweird.f32 %v574_v23 }
 0x120   : > { %v1622_v24 = vpop.eup %1621 }
 0x121   : > { %v576_v25 = vmul.f32 %v1622_v24, %v574_v23  ;;  %vm582_vm2 = vweird.f32 %v1622_v24 }
 0x122   : > { %vm583_vm4 = vmor %vm581_vm3, %vm582_vm2 }
 0x123   : > { %v577_v26 = vmul.f32 %v1622_v24, %v576_v25 }
 0x125   : > { %v578_v27 = vmul.f32 0.5, %v577_v26  ;;  %v2002_v26 = vld [vmem:[%s506_s22] sm:$0xf]  ;;  %s1761_s22 = smov 72  }
 0x127   : > { %v579_v28 = vsub.f32 1.5, %v578_v27  ;;  %v2004_v27 = vstv %s545_s28  ;;  %s1762_s28 = smov 8  }
 0x129   : > { %v580_v29 = vmul.f32 %v1622_v24, %v579_v28  ;;  %v2006_v28 = vstv %s1470_s21  ;;  %s1763_s21 = smov 16  }
 0x12b   : > { %v584_v31 = vsel %vm583_vm4, %v1622_v24, %v580_v29  ;;  %v2008_v29 = vstv %s1471_s25  ;;  %s1764_s25 = smov 24  }
 0x12c   : > { %v585_v32 = vmul.f32 %v584_v31, %v568_v11  ;;  %v2012_v31 = vstv %s1473_s0 }
 0x12e   : > { %v589_v34 = vmul.f32 %v1613_v30, %v585_v32  ;;  %v2010_v30 = vstv %s1472_s26 }
 0x130   : > { %v1927_v35 = vadd.f32 %v1614_v33, %v589_v34  ;;  %v2014_v33 = vstv %s1474_s3  ;;  %v2016_v34 = vstv %s1475_s27 }
 0x132   : > { %1477 = vmatmul.msk.f32.vlgmr.msra.gmra.mxu1 %vm556_vm0, %v1927_v35 }
 0x1af   : > { %v1931_v36 = vpop.f32.mrf.mxu1 }
 0x1b0   : > { %947 = vperm.xlu0 %1584, %v1931_v36   ;;  %802 = vperm.xlu2 %1582, %v1931_v36  }
 0x1b1   : > { %651 = vperm.xlu1 %1580, %v1931_v36  }
 0x1b8   : > { %1595 = vset.pattern.permute.xlu0 %v1729_v37  ;;  %1583 = vset.pattern.permute.xlu2 %v1730_v38  ;;  %v2018_v37 = vstv %s1476_s4  ;;  %v746_v38 = vunpack.c.l.bf16 %v2002_v26  ;;  %s1758_s4 = smov 96  }
 0x1b9   : > { %1581 = vset.pattern.permute.xlu1 %v1731_v39  ;;  %711 = vperm.xlu0 %1595, %v1931_v36  }
 0x1ba   : > { %813 = vperm.xlu2 %1583, %v1931_v36   ;;  %663 = vperm.xlu1 %1581, %v1931_v36   ;;  %vm2038_vm13 = vcmp.gt.f32.partialorder %v746_v38, 0.0 }
 0x1c1   : > { %1600 = vset.pattern.permute.xlu0 %v1732_v40 }
 0x1c2   : > { %1586 = vset.pattern.permute.xlu2 %v1733_v41  ;;  %1585 = vset.pattern.permute.xlu1 %v1734_v42 }
 0x1c3   : > { %723 = vperm.xlu0 %1600, %v1931_v36   ;;  %675 = vperm.xlu2 %1586, %v1931_v36  }
 0x1c4   : > { %958 = vperm.xlu1 %1585, %v1931_v36  }
 0x1cb   : > { %1605 = vset.pattern.permute.xlu0 %v1735_v43  ;;  %1588 = vset.pattern.permute.xlu2 %v1736_v44 }
 0x1cc   : > { %1587 = vset.pattern.permute.xlu1 %v1737_v45  ;;  %879 = vperm.xlu0 %1605, %v1931_v36  }
 0x1cd   : > { %969 = vperm.xlu2 %1588, %v1931_v36   ;;  %824 = vperm.xlu1 %1587, %v1931_v36  }
 0x1d4   : > { %1609 = vset.pattern.permute.xlu0 %v1738_v46 }
 0x1d5   : > { %1590 = vset.pattern.permute.xlu2 %v1739_v47  ;;  %1589 = vset.pattern.permute.xlu1 %v1740_v48 }
 0x1d6   : > { %1147 = vperm.xlu0 %1609, %v1931_v36   ;;  %835 = vperm.xlu2 %1590, %v1931_v36  }
 0x1d7   : > { %687 = vperm.xlu1 %1589, %v1931_v36  }
 0x1de   : > { %1592 = vset.pattern.permute.xlu2 %v1741_v49 }
 0x1df   : > { %1591 = vset.pattern.permute.xlu1 %v1742_v50  ;;  %699 = vperm.xlu2 %1592, %v1931_v36  }
 0x1e0   : > { %980 = vperm.xlu1 %1591, %v1931_v36  }
 0x1e7   : > { %1594 = vset.pattern.permute.xlu2 %v1743_v51 }
 0x1e8   : > { %1593 = vset.pattern.permute.xlu1 %v1744_v52  ;;  %991 = vperm.xlu2 %1594, %v1931_v36  }
 0x1e9   : > { %846 = vperm.xlu1 %1593, %v1931_v36  }
 0x1f0   : > { %1597 = vset.pattern.permute.xlu2 %v1745_v53 }
 0x1f1   : > { %1596 = vset.pattern.permute.xlu1 %v1746_v54  ;;  %1092 = vperm.xlu2 %1597, %v1931_v36  }
 0x1f2   : > { %857 = vperm.xlu1 %1596, %v1931_v36  }
 0x1f9   : > { %1599 = vset.pattern.permute.xlu2 %v1747_v55 }
 0x1fa   : > { %1598 = vset.pattern.permute.xlu1 %v1748_v56  ;;  %1002 = vperm.xlu2 %1599, %v1931_v36  }
 0x1fb   : > { %1103 = vperm.xlu1 %1598, %v1931_v36  }
 0x202   : > { %1602 = vset.pattern.permute.xlu2 %v1749_v57 }
 0x203   : > { %1601 = vset.pattern.permute.xlu1 %v1750_v58  ;;  %1114 = vperm.xlu2 %1602, %v1931_v36  }
 0x204   : > { %868 = vperm.xlu1 %1601, %v1931_v36  }
 0x20a   : > { %v1966_v2 = vpop.permute.xlu2 %802 }
 0x20b   : > { %1604 = vset.pattern.permute.xlu2 %v1751_v59 }
 0x20c   : > { %1603 = vset.pattern.permute.xlu1 %v1752_v60  ;;  %735 = vperm.xlu2 %1604, %v1931_v36  }
 0x20d   : > { %1013 = vperm.xlu1 %1603, %v1931_v36  }
 0x214   : > { %1607 = vset.pattern.permute.xlu2 %v1753_v61  ;;  %v1968_v3 = vpop.permute.xlu2 %813 }
 0x215   : > { %1606 = vset.pattern.permute.xlu1 %v1754_v62  ;;  %1024 = vperm.xlu2 %1607, %v1931_v36  }
 0x216   : > { %1125 = vperm.xlu1 %1606, %v1931_v36  }
 0x21d   : > { %v676_v4 = vpop.permute.xlu2 %675 }
 0x21e   : > { %1608 = vset.pattern.permute.xlu1 %v1755_v63 }
 0x21f   : > { %1136 = vperm.xlu1 %1608, %v1931_v36  }
 0x222   : > { %v1992_v22 = vpop.permute.xlu0 %947 }
 0x223   : > { %v652_v5 = vpop.permute.xlu1 %651 }
 0x227   : > { %1610 = vset.pattern.permute.xlu1 %v1756_v0  ;;  %v1970_v6 = vpop.permute.xlu2 %969 }
 0x228   : > { %1158 = vperm.xlu1 %1610, %v1931_v36  }
 0x22b   : > { %v712_v25 = vpop.permute.xlu0 %711 }
 0x22c   : > { %v664_v7 = vpop.permute.xlu1 %663 }
 0x230   : > { %1611 = vset.pattern.permute.xlu1 %v1757_v1  ;;  %v1972_v9 = vpop.permute.xlu2 %835 }
 0x231   : > { %1169 = vperm.xlu1 %1611, %v1931_v36  }
 0x235   : > { %v724_v48 = vpop.permute.xlu0 %723 }
 0x236   : > { %v1974_v10 = vpop.permute.xlu1 %958 }
 0x239   : > { %v700_v11 = vpop.permute.xlu2 %699 }
 0x23b   : > { %617 = vxpose.xlu2.b32.start.end [1/1] (short) (narrow) %v1931_v36, 32 }
 0x23f   : > { %v1976_v12 = vpop.permute.xlu1 %824 }
 0x242   : > { %v1978_v13 = vpop.permute.xlu2 %991 }
 0x249   : > { %v688_v14 = vpop.permute.xlu1 %687 }
 0x24b   : > { %v1980_v15 = vpop.permute.xlu2 %1092 }
 0x252   : > { %v1982_v16 = vpop.permute.xlu1 %980 }
 0x254   : > { %v1984_v17 = vpop.permute.xlu2 %1002 }
 0x25b   : > { %v1986_v18 = vpop.permute.xlu1 %846 }
 0x25d   : > { %v1988_v19 = vpop.permute.xlu2 %1114 }
 0x264   : > { %v1990_v20 = vpop.permute.xlu1 %857 }
 0x266   : > { %v736_v21 = vpop.permute.xlu2 %735 }
 0x26d   : > { %v1995_v23 = vpop.permute.xlu1 %1103 }
 0x26f   : > { %v1997_v24 = vpop.permute.xlu2 %1024 }
 0x276   : > { %v2021_v43 = vpop.permute.xlu1 %868 }
 0x2d4   : > { %v633_v32 = vpop.trf.xlu2 }
 0x2d5   : > { %v654_v39 = vperm.slane %v633_v32, 0  ;;  %v666_v40 = vperm.slane %v633_v32, 1  ;;  %v678_v41 = vperm.slane %v633_v32, 2  ;;  %v690_v42 = vperm.slane %v633_v32, 3 }
 0x2d6   : > { %v702_v44 = vperm.slane %v633_v32, 4  ;;  %v714_v45 = vperm.slane %v633_v32, 5  ;;  %v726_v46 = vperm.slane %v633_v32, 6  ;;  %v738_v47 = vperm.slane %v633_v32, 7 }
 0x2d7   : > { %v655_v49 = vadd.f32 %v654_v39, %v652_v5  ;;  %v667_v50 = vadd.f32 %v666_v40, %v664_v7  ;;  %v679_v51 = vadd.f32 %v678_v41, %v676_v4  ;;  %v691_v52 = vadd.f32 %v690_v42, %v688_v14 }
 0x2d8   : > { %v703_v53 = vadd.f32 %v702_v44, %v700_v11  ;;  %v715_v54 = vadd.f32 %v714_v45, %v712_v25  ;;  %v727_v55 = vadd.f32 %v726_v46, %v724_v48  ;;  %v739_v56 = vadd.f32 %v738_v47, %v736_v21  ;;  %v2036_v45 = vpop.permute.xlu1 %1013 }
 0x2d9   : > { %vm656_vm5 = vcmp.ge.f32.partialorder %v655_v49, 0.0  ;;  %v657_v57 = vmul.f32 0.2, %v655_v49  ;;  %vm668_vm6 = vcmp.ge.f32.partialorder %v667_v50, 0.0  ;;  %v669_v58 = vmul.f32 0.2, %v667_v50 }
 0x2da   : > { %vm680_vm7 = vcmp.ge.f32.partialorder %v679_v51, 0.0  ;;  %v681_v59 = vmul.f32 0.2, %v679_v51  ;;  %vm692_vm8 = vcmp.ge.f32.partialorder %v691_v52, 0.0  ;;  %v693_v60 = vmul.f32 0.2, %v691_v52 }
 0x2db   : > { %v658_v61 = vsel %vm656_vm5, %v655_v49, %v657_v57  ;;  %v670_v62 = vsel %vm668_vm6, %v667_v50, %v669_v58  ;;  %vm704_vm9 = vcmp.ge.f32.partialorder %v703_v53, 0.0  ;;  %v705_v63 = vmul.f32 0.2, %v703_v53 }
 0x2dc   : > { %v2023_v0 = vpop.trf.xlu2  ;;  %v660_v1 = vmul.f32 %v2004_v27, %v658_v61  ;;  %v672_v4 = vmul.f32 %v2006_v28, %v670_v62  ;;  %v682_v5 = vsel %vm680_vm7, %v679_v51, %v681_v59  ;;  %v694_v7 = vsel %vm692_vm8, %v691_v52, %v693_v60 }
 0x2dd   : > { %v805_v11 = vperm.slane %v2023_v0, 0  ;;  %v816_v14 = vperm.slane %v2023_v0, 1  ;;  %v827_v21 = vperm.slane %v2023_v0, 2  ;;  %v838_v25 = vperm.slane %v2023_v0, 3 }
 0x2de   : > { %v673_v26 = vadd.f32 %v672_v4, %v660_v1  ;;  %v684_v32 = vmul.f32 %v2008_v29, %v682_v5  ;;  %v696_v39 = vmul.f32 %v2010_v30, %v694_v7  ;;  %v706_v40 = vsel %vm704_vm9, %v703_v53, %v705_v63 }
 0x2df   : > { %v806_v41 = vadd.f32 %v805_v11, %v1966_v2  ;;  %v817_v42 = vadd.f32 %v816_v14, %v1968_v3  ;;  %v708_v44 = vmul.f32 %v2012_v31, %v706_v40  ;;  %vm716_vm10 = vcmp.ge.f32.partialorder %v715_v54, 0.0 }
 0x2e0   : > { %v685_v46 = vadd.f32 %v684_v32, %v673_v26  ;;  %v717_v47 = vmul.f32 0.2, %v715_v54  ;;  %vm728_vm11 = vcmp.ge.f32.partialorder %v727_v55, 0.0  ;;  %v729_v48 = vmul.f32 0.2, %v727_v55 }
 0x2e1   : > { %vm740_vm12 = vcmp.ge.f32.partialorder %v739_v56, 0.0  ;;  %v741_v49 = vmul.f32 0.2, %v739_v56  ;;  %vm807_vm14 = vcmp.ge.f32.partialorder %v806_v41, 0.0  ;;  %v808_v51 = vmul.f32 0.2, %v806_v41 }
 0x2e2   : > { %v697_v2 = vadd.f32 %v696_v39, %v685_v46  ;;  %v718_v52 = vsel %vm716_vm10, %v715_v54, %v717_v47  ;;  %v730_v3 = vsel %vm728_vm11, %v727_v55, %v729_v48  ;;  %vm818_vm15 = vcmp.ge.f32.partialorder %v817_v42, 0.0 }
 0x2e3   : > { %v720_v53 = vmul.f32 %v2014_v33, %v718_v52  ;;  %v732_v57 = vmul.f32 %v2016_v34, %v730_v3  ;;  %v742_v58 = vsel %vm740_vm12, %v739_v56, %v741_v49  ;;  %v809_v59 = vsel %vm807_vm14, %v806_v41, %v808_v51 }
 0x2e4   : > { %v2044_v60 = vpop.trf.xlu2  ;;  %v709_v61 = vadd.f32 %v708_v44, %v697_v2  ;;  %v744_v38 = vmul.f32 %v2018_v37, %v742_v58  ;;  %v810_v62 = vmul.f32 %v809_v59, %v2004_v27  ;;  %v819_v63 = vmul.f32 0.2, %v817_v42 }
 0x2e5   : > { %v950_v1 = vperm.slane %v2044_v60, 0  ;;  %v961_v54 = vperm.slane %v2044_v60, 1  ;;  %v972_v55 = vperm.slane %v2044_v60, 2  ;;  %v983_v4 = vperm.slane %v2044_v60, 3 }
 0x2e6   : > { %v721_v5 = vadd.f32 %v720_v53, %v709_v61  ;;  %v820_v56 = vsel %vm818_vm15, %v817_v42, %v819_v63  ;;  %v828_v7 = vadd.f32 %v827_v21, %v1976_v12  ;;  %v839_v11 = vadd.f32 %v838_v25, %v1972_v9  ;;  %v2061_v21 = vpop.permute.xlu1 %1125 }
 0x2e7   : > { %v951_v14 = vadd.f32 %v950_v1, %v1992_v22  ;;  %v962_v26 = vadd.f32 %v961_v54, %v1974_v10  ;;  %v821_v32 = vmul.f32 %v820_v56, %v2006_v28  ;;  %v849_v39 = vperm.slane %v2023_v0, 4 }
 0x2e8   : > { %v733_v40 = vadd.f32 %v732_v57, %v721_v5  ;;  %vm829_vm2 = vcmp.ge.f32.partialorder %v828_v7, 0.0  ;;  %v830_v41 = vmul.f32 0.2, %v828_v7  ;;  %vm840_vm3 = vcmp.ge.f32.partialorder %v839_v11, 0.0 }
 0x2e9   : > { %v822_v44 = vadd.f32 %v821_v32, %v810_v62  ;;  %v841_v46 = vmul.f32 0.2, %v839_v11  ;;  %v850_v42 = vadd.f32 %v849_v39, %v1986_v18  ;;  %v860_v12 = vperm.slane %v2023_v0, 5  ;;  %v880_v62 = vpop.permute.xlu0 %879 }
 0x2ea   : > { %v745_v9 = vadd.f32 %v744_v38, %v733_v40  ;;  %v831_v22 = vsel %vm829_vm2, %v828_v7, %v830_v41  ;;  %v871_v10 = vperm.slane %v2023_v0, 6  ;;  %v882_v25 = vperm.slane %v2023_v0, 7 }
 0x2eb   : > { %v832_v47 = vmul.f32 %v831_v22, %v2008_v29  ;;  %v842_v48 = vsel %vm840_vm3, %v839_v11, %v841_v46  ;;  %vm851_vm4 = vcmp.ge.f32.partialorder %v850_v42, 0.0  ;;  %v852_v49 = vmul.f32 0.2, %v850_v42 }
 0x2ec   : > { %v2066_v51 = vpop.trf.xlu2  ;;  %v2070_v18 = vsel %vm2038_vm13, %v745_v9, -3.4028235e+38  ;;  %v843_v2 = vmul.f32 %v842_v48, %v2010_v30  ;;  %v861_v52 = vadd.f32 %v860_v12, %v1990_v20  ;;  %v872_v3 = vadd.f32 %v871_v10, %v2021_v43 }
 0x2ed   : > { %v1095_v53 = vperm.slane %v2066_v51, 0  ;;  %v1106_v0 = vperm.slane %v2066_v51, 1  ;;  %v1117_v57 = vperm.slane %v2066_v51, 2  ;;  %v1128_v58 = vperm.slane %v2066_v51, 3 }
 0x2ee   : > { %v750_v59 = vsel %vm749_vm1, %v2070_v18, -inf  ;;  %v833_v61 = vadd.f32 %v832_v47, %v822_v44  ;;  %v853_v38 = vsel %vm851_vm4, %v850_v42, %v852_v49  ;;  %vm862_vm5 = vcmp.ge.f32.partialorder %v861_v52, 0.0  ;;  %v2090_v46 = vpop.permute.xlu1 %1136 }
 0x2ef   : > { %v2082_v63 = vadd.f32 %v1095_v53, %v1980_v15  ;;  %v2085_v20 = vadd.f32 %v1106_v0, %v1995_v23  ;;  %751 = vmax.xlane.f32.xlu0 %v750_v59  ;;  %v854_v43 = vmul.f32 %v853_v38, %v2012_v31  ;;  %v863_v1 = vmul.f32 0.2, %v861_v52 }
 0x2f0   : > { %v844_v54 = vadd.f32 %v843_v2, %v833_v61  ;;  %vm873_vm6 = vcmp.ge.f32.partialorder %v872_v3, 0.0  ;;  %v874_v5 = vmul.f32 0.2, %v872_v3  ;;  %v883_v56 = vadd.f32 %v882_v25, %v880_v62 }
 0x2f1   : > { %v864_v7 = vsel %vm862_vm5, %v861_v52, %v863_v1  ;;  %vm952_vm7 = vcmp.ge.f32.partialorder %v951_v14, 0.0  ;;  %v953_v11 = vmul.f32 0.2, %v951_v14  ;;  %vm963_vm8 = vcmp.ge.f32.partialorder %v962_v26, 0.0 }
 0x2f2   : > { %v855_v32 = vadd.f32 %v854_v43, %v844_v54  ;;  %v865_v39 = vmul.f32 %v864_v7, %v2014_v33  ;;  %v875_v15 = vsel %vm873_vm6, %v872_v3, %v874_v5  ;;  %vm884_vm9 = vcmp.ge.f32.partialorder %v883_v56, 0.0 }
 0x2f3   : > { %v876_v23 = vmul.f32 %v875_v15, %v2016_v34  ;;  %v885_v40 = vmul.f32 0.2, %v883_v56  ;;  %v954_v41 = vsel %vm952_vm7, %v951_v14, %v953_v11  ;;  %v964_v44 = vmul.f32 0.2, %v962_v26 }
 0x2f4   : > { %v866_v42 = vadd.f32 %v865_v39, %v855_v32  ;;  %v955_v12 = vmul.f32 %v954_v41, %v2004_v27  ;;  %v973_v9 = vadd.f32 %v972_v55, %v1970_v6  ;;  %v984_v22 = vadd.f32 %v983_v4, %v1982_v16 }
 0x2f5   : > { %v886_v10 = vsel %vm884_vm9, %v883_v56, %v885_v40  ;;  %v965_v25 = vsel %vm963_vm8, %v962_v26, %v964_v44  ;;  %v994_v47 = vperm.slane %v2044_v60, 4  ;;  %v1005_v14 = vperm.slane %v2044_v60, 5 }
 0x2f6   : > { %v877_v48 = vadd.f32 %v876_v23, %v866_v42  ;;  %v887_v49 = vmul.f32 %v886_v10, %v2018_v37  ;;  %v966_v2 = vmul.f32 %v965_v25, %v2006_v28  ;;  %vm974_vm10 = vcmp.ge.f32.partialorder %v973_v9, 0.0  ;;  %v1159_v39 = vpop.permute.xlu1 %1158 }
 0x2f7   : > { %v975_v52 = vmul.f32 0.2, %v973_v9  ;;  %vm985_vm11 = vcmp.ge.f32.partialorder %v984_v22, 0.0  ;;  %v986_v3 = vmul.f32 0.2, %v984_v22  ;;  %v995_v6 = vadd.f32 %v994_v47, %v1978_v13 }
 0x2f8   : > { %v888_v55 = vadd.f32 %v887_v49, %v877_v48  ;;  %v967_v53 = vadd.f32 %v966_v2, %v955_v12  ;;  %v1006_v16 = vadd.f32 %v1005_v14, %v1984_v17  ;;  %v1016_v4 = vperm.slane %v2044_v60, 6 }
 0x2f9   : > { %v976_v26 = vsel %vm974_vm10, %v973_v9, %v975_v52  ;;  %v987_v0 = vsel %vm985_vm11, %v984_v22, %v986_v3  ;;  %vm996_vm12 = vcmp.ge.f32.partialorder %v995_v6, 0.0  ;;  %v997_v59 = vmul.f32 0.2, %v995_v6 }
 0x2fa   : > { %v2108_v61 = vsel %vm2038_vm13, %v888_v55, -3.4028235e+38  ;;  %v977_v38 = vmul.f32 %v976_v26, %v2008_v29  ;;  %v988_v62 = vmul.f32 %v987_v0, %v2010_v30  ;;  %vm1007_vm14 = vcmp.ge.f32.partialorder %v1006_v16, 0.0 }
 0x2fb   : > { %v890_v13 = vsel %vm749_vm1, %v2108_v61, -inf  ;;  %v998_v43 = vsel %vm996_vm12, %v995_v6, %v997_v59  ;;  %v1008_v17 = vmul.f32 0.2, %v1006_v16  ;;  %v1017_v1 = vadd.f32 %v1016_v4, %v2036_v45 }
 0x2fc   : > { %891 = vmax.xlane.f32.xlu1 %v890_v13  ;;  %v978_v54 = vadd.f32 %v977_v38, %v967_v53  ;;  %v999_v5 = vmul.f32 %v998_v43, %v2012_v31  ;;  %v1027_v56 = vperm.slane %v2044_v60, 7  ;;  %vm1097_vm15 = vcmp.ge.f32.partialorder %v2082_v63, 0.0 }
 0x2fd   : > { %v1009_v7 = vsel %vm1007_vm14, %v1006_v16, %v1008_v17  ;;  %vm1018_vm2 = vcmp.ge.f32.partialorder %v1017_v1, 0.0  ;;  %v1019_v11 = vmul.f32 0.2, %v1017_v1  ;;  %v1098_v32 = vmul.f32 0.2, %v2082_v63 }
 0x2fe   : > { %v989_v15 = vadd.f32 %v988_v62, %v978_v54  ;;  %v1010_v23 = vmul.f32 %v1009_v7, %v2014_v33  ;;  %v1028_v40 = vadd.f32 %v1027_v56, %v1997_v24  ;;  %vm1108_vm3 = vcmp.ge.f32.partialorder %v2085_v20, 0.0  ;;  %v1170_v26 = vpop.permute.xlu1 %1169 }
 0x2ff   : > { %v1020_v45 = vsel %vm1018_vm2, %v1017_v1, %v1019_v11  ;;  %v1099_v41 = vsel %vm1097_vm15, %v2082_v63, %v1098_v32  ;;  %v1109_v60 = vmul.f32 0.2, %v2085_v20  ;;  %v1118_v44 = vadd.f32 %v1117_v57, %v1988_v19 }
 0x300   : > { %v1000_v42 = vadd.f32 %v999_v5, %v989_v15  ;;  %v1021_v12 = vmul.f32 %v1020_v45, %v2016_v34  ;;  %vm1029_vm4 = vcmp.ge.f32.partialorder %v1028_v40, 0.0  ;;  %v1030_v9 = vmul.f32 0.2, %v1028_v40 }
 0x301   : > { %v1100_v22 = vmul.f32 %v1099_v41, %v2004_v27  ;;  %v1110_v24 = vsel %vm1108_vm3, %v2085_v20, %v1109_v60  ;;  %vm1119_vm5 = vcmp.ge.f32.partialorder %v1118_v44, 0.0  ;;  %v1120_v10 = vmul.f32 0.2, %v1118_v44  ;;  %v1148_v27 = vpop.permute.xlu0 %1147 }
 0x302   : > { %v1011_v25 = vadd.f32 %v1010_v23, %v1000_v42  ;;  %v1031_v47 = vsel %vm1029_vm4, %v1028_v40, %v1030_v9  ;;  %v1111_v63 = vmul.f32 %v1110_v24, %v2006_v28  ;;  %v1129_v14 = vadd.f32 %v1128_v58, %v2061_v21 }
 0x303   : > { %v1032_v19 = vmul.f32 %v1031_v47, %v2018_v37  ;;  %v1121_v57 = vsel %vm1119_vm5, %v1118_v44, %v1120_v10  ;;  %v1139_v48 = vperm.slane %v2066_v51, 4  ;;  %v1150_v49 = vperm.slane %v2066_v51, 5 }
 0x304   : > { %v1022_v2 = vadd.f32 %v1021_v12, %v1011_v25  ;;  %v1112_v20 = vadd.f32 %v1111_v63, %v1100_v22  ;;  %v1122_v52 = vmul.f32 %v1121_v57, %v2008_v29  ;;  %vm1130_vm6 = vcmp.ge.f32.partialorder %v1129_v14, 0.0 }
 0x305   : > { %v1131_v3 = vmul.f32 0.2, %v1129_v14  ;;  %v1140_v28 = vadd.f32 %v1139_v48, %v2090_v46  ;;  %v1151_v6 = vadd.f32 %v1150_v49, %v1148_v27  ;;  %v1161_v55 = vperm.slane %v2066_v51, 6 }
 0x306   : > { %v1033_v21 = vadd.f32 %v1032_v19, %v1022_v2  ;;  %v1123_v58 = vadd.f32 %v1122_v52, %v1112_v20  ;;  %v1172_v53 = vperm.slane %v2066_v51, 7 }
 0x307   : > { %v1132_v16 = vsel %vm1130_vm6, %v1129_v14, %v1131_v3  ;;  %vm1141_vm7 = vcmp.ge.f32.partialorder %v1140_v28, 0.0  ;;  %v1142_v4 = vmul.f32 0.2, %v1140_v28  ;;  %vm1152_vm8 = vcmp.ge.f32.partialorder %v1151_v6, 0.0 }
 0x308   : > { %v1034_v0 = vsel %vm2038_vm13, %v1033_v21, -3.4028235e+38  ;;  %v1133_v29 = vmul.f32 %v1132_v16, %v2010_v30  ;;  %v1153_v59 = vmul.f32 0.2, %v1151_v6  ;;  %v1162_v38 = vadd.f32 %v1161_v55, %v1159_v39 }
 0x309   : > { %v1035_v46 = vsel %vm749_vm1, %v1034_v0, -inf  ;;  %v1143_v62 = vsel %vm1141_vm7, %v1140_v28, %v1142_v4  ;;  %v1173_v13 = vadd.f32 %v1172_v53, %v1170_v26 }
 0x30a   : > { %1036 = vmax.xlane.f32.xlu2 %v1035_v46  ;;  %v1134_v43 = vadd.f32 %v1133_v29, %v1123_v58  ;;  %v1144_v51 = vmul.f32 %v1143_v62, %v2012_v31  ;;  %v1154_v17 = vsel %vm1152_vm8, %v1151_v6, %v1153_v59  ;;  %vm1163_vm9 = vcmp.ge.f32.partialorder %v1162_v38, 0.0 }
 0x30b   : > { %v1164_v1 = vmul.f32 0.2, %v1162_v38  ;;  %vm1174_vm10 = vcmp.ge.f32.partialorder %v1173_v13, 0.0  ;;  %v1175_v54 = vmul.f32 0.2, %v1173_v13  ;;  %v1155_v56 = vmul.f32 %v1154_v17, %v2014_v33 }
 0x30c   : > { %v1145_v5 = vadd.f32 %v1144_v51, %v1134_v43 }
 0x30d   : > { %v1165_v7 = vsel %vm1163_vm9, %v1162_v38, %v1164_v1  ;;  %v1176_v30 = vsel %vm1174_vm10, %v1173_v13, %v1175_v54 }
 0x30e   : > { %v1156_v11 = vadd.f32 %v1155_v56, %v1145_v5  ;;  %v1166_v32 = vmul.f32 %v1165_v7, %v2016_v34  ;;  %v1177_v15 = vmul.f32 %v1176_v30, %v2018_v37 }
 0x310   : > { %v1167_v39 = vadd.f32 %v1166_v32, %v1156_v11 }
 0x312   : > { %v1178_v23 = vadd.f32 %v1177_v15, %v1167_v39 }
 0x314   : > { %v1179_v31 = vsel %vm2038_vm13, %v1178_v23, -3.4028235e+38 }
 0x315   : > { %v1180_v40 = vsel %vm749_vm1, %v1179_v31, -inf  ;;  %774 = vrot.lane.b32.xlu1 %v1931_v36, %s1758_s4 }
 0x316   : > { %1181 = vmax.xlane.f32.xlu0 %v1180_v40 }
 0x32a   : > { %914 = vrot.lane.b32.xlu0 %v1931_v36, %s1759_s6 }
 0x362   : > { %v752_v33 = vpop.xlane.xlu0 %751 }
 0x363   : > { %v753_v45 = vsub.f32 %v2070_v18, %v752_v33 }
 0x365   : > { %v754_v34 = vmul.f32 1.442695, %v753_v45 }
 0x367   : > { %1623 = vpow2.f32 %v754_v34 }
 0x36d   : > { %v1624_v41 = vpop.eup %1623 }
 0x36e   : > { %v756_v37 = vsel %vm749_vm1, %v1624_v41, 0.0 }
 0x36f   : > { %v892_v60 = vpop.xlane.xlu1 %891  ;;  %757 = vadd.xlane.f32.xlu1 %v756_v37 }
 0x370   : > { %v893_v50 = vsub.f32 %v2108_v61, %v892_v60 }
 0x372   : > { %v894_v44 = vmul.f32 1.442695, %v893_v50 }
 0x374   : > { %1625 = vpow2.f32 %v894_v44 }
 0x37a   : > { %v1626_v42 = vpop.eup %1625 }
 0x37b   : > { %v896_v12 = vsel %vm749_vm1, %v1626_v42, 0.0 }
 0x37c   : > { %897 = vadd.xlane.f32.xlu0 %v896_v12 }
 0x37d   : > { %v1037_v9 = vpop.xlane.xlu2 %1036 }
 0x37e   : > { %v1038_v22 = vsub.f32 %v1034_v0, %v1037_v9 }
 0x380   : > { %v1039_v24 = vmul.f32 1.442695, %v1038_v22 }
 0x382   : > { %1627 = vpow2.f32 %v1039_v24 }
 0x387   : > { %v775_v18 = vpop.permute.xlu1 %774 }
 0x388   : > { %v2158_v10 = vpop.eup %1627  ;;  %795 = vmatpush.msrb.mxu1 %v775_v18 }
 0x389   : > { %v1182_v25 = vpop.xlane.xlu0 %1181  ;;  %v1041_v47 = vsel %vm749_vm1, %v2158_v10, 0.0 }
 0x38a   : > { %v1183_v63 = vsub.f32 %v1179_v31, %v1182_v25  ;;  %1042 = vadd.xlane.f32.xlu1 %v1041_v47  ;;  %v517_v25 = vld [vmem:[%s2309_s5 + $0x10] sm:$0xff]  ;;  %v516_v47 = vld [vmem:[%s2309_s5 + $0x8] sm:$0xff] }
 0x38c   : > { %v1184_v61 = vmul.f32 1.442695, %v1183_v63  ;;  %v515_v63 = vld [vmem:[%s2309_s5] sm:$0xff] }
 0x38e   : > { %1629 = vpow2.f32 %v1184_v61 }
 0x394   : > { %v2162_v14 = vpop.eup %1629 }
 0x395   : > { %v1186_v19 = vsel %vm749_vm1, %v2162_v14, 0.0 }
 0x396   : > { %1187 = vadd.xlane.f32.xlu0 %v1186_v19 }
 0x39c   : > { %v915_v57 = vpop.permute.xlu0 %914 }
 0x39d   : > { %935 = vmatpush.msra.mxu2 %v915_v57 }
 0x3a3   : > { %1059 = vrot.lane.b32.xlu1 %v1931_v36, %s1760_s7 }
 0x3aa   : > { %1204 = vrot.lane.b32.xlu0 %v1931_v36, %s1761_s22 }
 0x3e2   : > { %v758_v48 = vpop.xlane.xlu1 %757 }
 0x3e3   : > { %1631 = vrcp.f32 %v758_v48  ;;  %v770_v20 = vand.u32 2147483648, %v758_v48  ;;  %v768_v3 = vand.u32 2147483647, %v758_v48  ;;  %vm764_vm11 = vweird.f32 %v758_v48 }
 0x3e5   : > { %v771_v55 = vor.u32 1.1754944e-38, %v770_v20  ;;  %vm769_vm14 = vcmp.eq.f32.partialorder %v768_v3, 8.507059e+37 }
 0x3e9   : > { %v1632_v49 = vpop.eup %1631 }
 0x3ea   : > { %v760_v27 = vmul.f32 %v1632_v49, %v758_v48  ;;  %vm765_vm13 = vweird.f32 %v1632_v49 }
 0x3eb   : > { %vm766_vm12 = vmor %vm764_vm11, %vm765_vm13 }
 0x3ec   : > { %v761_v2 = vsub.f32 1.0, %v760_v27 }
 0x3ee   : > { %v762_v52 = vmul.f32 %v1632_v49, %v761_v2 }
 0x3ef   : > { %v898_v28 = vpop.xlane.xlu0 %897 }
 0x3f0   : > { %v763_v6 = vadd.f32 %v1632_v49, %v762_v52  ;;  %1633 = vrcp.f32 %v898_v28  ;;  %v910_v26 = vand.u32 2147483648, %v898_v28  ;;  %v908_v29 = vand.u32 2147483647, %v898_v28 }
 0x3f1   : > { %vm904_vm2 = vweird.f32 %v898_v28 }
 0x3f2   : > { %v767_v21 = vsel %vm766_vm12, %v1632_v49, %v763_v6  ;;  %v911_v46 = vor.u32 1.1754944e-38, %v910_v26  ;;  %vm909_vm4 = vcmp.eq.f32.partialorder %v908_v29, 8.507059e+37  ;;  %vm1089_vm12 = vcmask 195712   ;;  %v526_v6 = vld [vmem:[%s2314_s10 + $0x18] sm:$0xff]  ;;  %v540_v26 = vld [vmem:[%s2316_s12 + $0x60] sm:$0xff] }
 0x3f3   : > { %v772_v58 = vsel %vm769_vm14, %v771_v55, %v767_v21  ;;  %vm1234_vm14 = vcmask 261312   ;;  %v525_v55 = vld [vmem:[%s2314_s10 + $0x10] sm:$0xff]  ;;  %v523_v21 = vld [vmem:[%s2314_s10] sm:$0xff]  ;;  %v539_v29 = vld [vmem:[%s2316_s12 + $0x58] sm:$0xff] }
 0x3f4   : > { %v773_v53 = vmul.f32 %v1624_v41, %v772_v58  ;;  %v543_v58 = vld [vmem:[%s2316_s12 + $0x78] sm:$0xff] }
 0x3f5   : > { %1320 = vmatpush.msra.mxu0 %v543_v58 }
 0x3f6   : > { %v1634_v36 = vpop.eup %1633  ;;  %1478 = vmatmul.msk.f32.vlgmr.msrb.gmra.mxu1 %vm749_vm1, %v773_v53  ;;  %v542_v53 = vld [vmem:[%s2316_s12 + $0x70] sm:$0xff] }
 0x3f7   : > { %v900_v16 = vmul.f32 %v1634_v36, %v898_v28  ;;  %vm905_vm15 = vweird.f32 %v1634_v36  ;;  %1321 = vmatpush.msra.mxu0 %v542_v53 }
 0x3f8   : > { %vm906_vm3 = vmor %vm904_vm2, %vm905_vm15 }
 0x3f9   : > { %v901_v4 = vsub.f32 1.0, %v900_v16 }
 0x3fb   : > { %v902_v0 = vmul.f32 %v1634_v36, %v901_v4 }
 0x3fd   : > { %v1043_v59 = vpop.xlane.xlu1 %1042  ;;  %v903_v38 = vadd.f32 %v1634_v36, %v902_v0 }
 0x3fe   : > { %1635 = vrcp.f32 %v1043_v59  ;;  %v1055_v7 = vand.u32 2147483648, %v1043_v59  ;;  %vm1049_vm6 = vweird.f32 %v1043_v59  ;;  %v1053_v30 = vand.u32 2147483647, %v1043_v59 }
 0x3ff   : > { %v907_v62 = vsel %vm906_vm3, %v1634_v36, %v903_v38  ;;  %v541_v36 = vld [vmem:[%s2316_s12 + $0x68] sm:$0xff]  ;;  %v536_v38 = vld [vmem:[%s2316_s12 + $0x40] sm:$0xff] }
 0x400   : > { %v912_v13 = vsel %vm909_vm4, %v911_v46, %v907_v62  ;;  %v1056_v39 = vor.u32 1.1754944e-38, %v1055_v7  ;;  %vm1054_vm8 = vcmp.eq.f32.partialorder %v1053_v30, 8.507059e+37  ;;  %1322 = vmatpush.msra.mxu0 %v541_v36  ;;  %v535_v62 = vld [vmem:[%s2316_s12 + $0x38] sm:$0xff]  ;;  %v1615_v30 = vld [vmem:[%s2312_s8] ss:$0 sm:$0xff] }
 0x401   : > { %v913_v43 = vmul.f32 %v1626_v42, %v912_v13 }
 0x402   : > { %1323 = vmatpush.msra.mxu0 %v540_v26 }
 0x403   : > { %1479 = vmatmul.msk.f32.vlgmr.msra.gmra.mxu2 %vm749_vm1, %v913_v43  ;;  %v534_v43 = vld [vmem:[%s2316_s12 + $0x30] sm:$0xff] }
 0x404   : > { %v1636_v51 = vpop.eup %1635  ;;  %1324 = vmatpush.msra.mxu0 %v539_v29 }
 0x405   : > { %v1045_v17 = vmul.f32 %v1636_v51, %v1043_v59  ;;  %vm1050_vm5 = vweird.f32 %v1636_v51  ;;  %v538_v59 = vld [vmem:[%s2316_s12 + $0x50] sm:$0xff] }
 0x406   : > { %vm1051_vm7 = vmor %vm1049_vm6, %vm1050_vm5  ;;  %1325 = vmatpush.msra.mxu0 %v538_v59 }
 0x407   : > { %v1046_v1 = vsub.f32 1.0, %v1045_v17  ;;  %v533_v17 = vld [vmem:[%s2316_s12 + $0x28] sm:$0xff] }
 0x409   : > { %v1047_v54 = vmul.f32 %v1636_v51, %v1046_v1  ;;  %v1188_v5 = vpop.xlane.xlu0 %1187 }
 0x40a   : > { %1637 = vrcp.f32 %v1188_v5  ;;  %v1200_v40 = vand.u32 2147483648, %v1188_v5  ;;  %v1198_v45 = vand.u32 2147483647, %v1188_v5  ;;  %vm1194_vm10 = vweird.f32 %v1188_v5 }
 0x40b   : > { %v1048_v56 = vadd.f32 %v1636_v51, %v1047_v54  ;;  %v532_v54 = vld [vmem:[%s2316_s12 + $0x20] sm:$0xff] }
 0x40c   : > { %v1201_v60 = vor.u32 1.1754944e-38, %v1200_v40  ;;  %vm1199_vm11 = vcmp.eq.f32.partialorder %v1198_v45, 8.507059e+37  ;;  %v529_v40 = vld [vmem:[%s2316_s12 + $0x8] sm:$0xff] }
 0x40d   : > { %v1052_v11 = vsel %vm1051_vm7, %v1636_v51, %v1048_v56  ;;  %v531_v56 = vld [vmem:[%s2316_s12 + $0x18] sm:$0xff] }
 0x40e   : > { %v1057_v23 = vsel %vm1054_vm8, %v1056_v39, %v1052_v11  ;;  %v1616_v39 = vld [vmem:[%s2313_s9] ss:$0 sm:$0xff] }
 0x40f   : > { %v1058_v41 = vmul.f32 %v2158_v10, %v1057_v23  ;;  %v518_v10 = vld [vmem:[%s2309_s5 + $0x18] sm:$0xff] }
 0x410   : > { %v1638_v32 = vpop.eup %1637  ;;  %1252 = vmatpush.msrb.mxu2 %v518_v10 }
 0x411   : > { %v1190_v15 = vmul.f32 %v1638_v32, %v1188_v5  ;;  %vm1195_vm9 = vweird.f32 %v1638_v32 }
 0x412   : > { %vm1196_vm13 = vmor %vm1194_vm10, %vm1195_vm9  ;;  %1253 = vmatpush.msrb.mxu2 %v517_v25 }
 0x413   : > { %v1191_v31 = vsub.f32 1.0, %v1190_v15 }
 0x414   : > { %1254 = vmatpush.msrb.mxu2 %v516_v47 }
 0x415   : > { %v1192_v33 = vmul.f32 %v1638_v32, %v1191_v31  ;;  %v1060_v34 = vpop.permute.xlu1 %1059  ;;  %v530_v31 = vld [vmem:[%s2316_s12 + $0x10] sm:$0xff] }
 0x416   : > { %1080 = vmatpush.msra.mxu3 %v1060_v34  ;;  %1255 = vmatpush.msrb.mxu2 %v515_v63  ;;  %v1765_v34 = vmov 0  }
 0x417   : > { %v1193_v37 = vadd.f32 %v1638_v32, %v1192_v33  ;;  %1480 = vmatmul.msk.f32.vlgmr.msra.gmra.mxu3 %vm749_vm1, %v1058_v41  ;;  %v528_v33 = vld [vmem:[%s2316_s12] sm:$0xff]  ;;  %1612 = vset.pattern.permute.xlu0 %v1765_v34 }
 0x418   : > { %1308 = vmatpush.msrb.mxu3 %v526_v6 }
 0x419   : > { %v1197_v50 = vsel %vm1196_vm13, %v1638_v32, %v1193_v37  ;;  %v1617_v37 = vld [vmem:[%s2315_s11] ss:$0 sm:$0xff] }
 0x41a   : > { %v1202_v44 = vsel %vm1199_vm11, %v1201_v60, %v1197_v50  ;;  %1309 = vmatpush.msrb.mxu3 %v525_v55 }
 0x41b   : > { %v1203_v42 = vmul.f32 %v2162_v14, %v1202_v44 }
 0x41c   : > { %v1205_v12 = vpop.permute.xlu0 %1204 }
 0x41d   : > { %1225 = vmatpush.msra.mxu1 %v1205_v12 }
 0x41e   : > { %1481 = vmatmul.msk.f32.vlgmr.msra.gmra.mxu1 %vm749_vm1, %v1203_v42  ;;  %v1618_v42 = vld [vmem:[%s2317_s13] ss:$0 sm:$0xff] }
 0x473   : > { %v797_v9 = vpop.f32.mrf.mxu1 }
 0x474   : > { %800 = vst.msk [vmem:[#allocation2] sm:$0xff] %vm749_vm1, %v797_v9  ;;  %vm944_vm1 = vcmask 130112  }
 0x486   : > { %v937_v22 = vpop.f32.mrf.mxu2 }
 0x487   : > { %941 = vrot.lane.b32.xlu1 %v937_v22, %s1762_s28  ;;  %s496_s28 = sand.u32 1, %s1714_s30  }
 0x49a   : > { %v1082_v24 = vpop.f32.mrf.mxu3 }
 0x49b   : > { %v1227_v18 = vpop.f32.mrf.mxu1  ;;  %1086 = vrot.lane.b32.xlu0 %v1082_v24, %s1763_s21  ;;  %s2335_s21 = sshll.u32 %s1895_s18, 3 }
 0x49c   : > { %1231 = vrot.lane.b32.xlu1 %v1227_v18, %s1764_s25  ;;  %s510_s0 = scalar_lea.vmem %s2306_s2, %s2335_s21  ;;  %s1466_s21 = sshll.u32 %s496_s28, 3 }
 0x49d   : > { %v555_v45 = vld [vmem:[%s510_s0] sm:$0xff]  ;;  %s1485_s25 = sshll.u32 %s1862_s17, 3  ;;  %s498_s4 = scalar_lea.vmem [#allocation6], %s1466_s21 }
 0x49e   : > { %vm1340_vm4 = vcmp.gt.f32.partialorder %v555_v45, 0.0  ;;  %s1360_s27 = scalar_lea.hbm %s2318_s14, %s1485_s25  ;;  %s1362_s6 = sshll.u32 %s498_s4, 4  ;;  %s1363_s6 = int_to_ptr.vmem [resolvable:$true] %s1362_s6 }
 0x49f   : > { %v1341_v41 = vsel %vm1340_vm4, 1, %v1765_v34  ;;  %s1364_s7 = sshll.u32 %s1360_s27, 4  ;;  %s1350_s17 = scalar_lea.sflag [#allocation4], %s496_s28  ;;  %s1365_s7 = int_to_ptr.hbm [resolvable:$true] %s1364_s7 }
 0x4a0   : > { %s1670_s18 = sshra.s32 %s1365_s7, 4  ;;  %s1676_s21 = scalar_lea.hbm %s2318_s14, 16  ;;  %s1671_s18 = int_to_ptr.hbm [resolvable:$true] %s1670_s18 }
 0x4a1   : > { %s1672_s22 = scalar_lea.hbm %s1671_s18, 8  ;;  %p1677_p3 = scmp.lt.s32.totalorder %s1671_s18, %s2318_s14 }
 0x4a2   : > { %p1673_p0 = scmp.ne.s32.totalorder %s1671_s18, %s1672_s22  ;;  %p1678_p4 = scmp.lt.s32.totalorder %s1676_s21, %s1672_s22 }
 0x4a4   : > { %p1674_p1 = pnand %p1673_p0, %p1879_p5  ;;  %p1679_p7 = por %p1678_p4, %p1677_p3 }
 0x4a6   : > { %p1675_p2 = pneg %p1674_p1 }
 0x4a8   : > { %p1680_p8 = pnand %p1679_p7, %p1675_p2 }
 0x4f9   : > { %v942_v61 = vpop.permute.xlu1 %941 }
 0x4fa   : > { %945 = vst.msk [vmem:[#allocation2] sm:$0xff] %vm944_vm1, %v942_v61 }
 0x50d   : > { %v1087_v14 = vpop.permute.xlu0 %1086 }
 0x50e   : > { %v1232_v19 = vpop.permute.xlu1 %1231  ;;  %1090 = vst.msk [vmem:[#allocation2] sm:$0xff] %vm1089_vm12, %v1087_v14 }
 0x50f   : > { %1235 = vst.msk [vmem:[#allocation2] sm:$0xff] %vm1234_vm14, %v1232_v19 }
 0x516   : > { %v1236_v57 = vld [vmem:[#allocation2] sm:$0xff] }
 0x517   : > { %1482 = vmatmul.msk.f32.vlgmr.msrb.gmra.mxu2 %vm556_vm0, %v1236_v57 }
 0x59a   : > { %v1257_v48 = vpop.f32.mrf.mxu2 }
 0x59b   : > { %v1258_v49 = vadd.f32 %v1257_v48, %v1927_v35  ;;  %v524_v35 = vld [vmem:[%s2314_s10 + $0x8] sm:$0xff] }
 0x59c   : > { %1310 = vmatpush.msrb.mxu3 %v524_v35 }
 0x59d   : > { %v1260_v27 = vsel %vm556_vm0, %v1258_v49, 0.0 }
 0x59e   : > { %1261 = vadd.xlane.f32.xlu0 %v1260_v27  ;;  %1311 = vmatpush.msrb.mxu3 %v523_v21 }
 0x5b2   : > { %1343 = vperm.xlu0 %1612, %v1341_v41  }
 0x611   : > { %v1262_v2 = vpop.xlane.xlu0 %1261 }
 0x612   : > { %v1263_v20 = vmul.f32 %v1262_v2, %v1904_v8 }
 0x614   : > { %v1264_v52 = vsub.f32 %v1258_v49, %v1263_v20 }
 0x616   : > { %v1265_v3 = vmul.f32 %v1264_v52, %v1264_v52 }
 0x618   : > { %v1266_v28 = vsel %vm556_vm0, %v1265_v3, 0.0 }
 0x619   : > { %1267 = vadd.xlane.f32.xlu1 %v1266_v28 }
 0x624   : > { %v1344_v12 = vpop.permute.xlu0 %1343 }
 0x625   : > { %vm1345_vm5 = vcmp.eq.s32.totalorder %v1344_v12, 1 }
 0x68c   : > { %v1268_v16 = vpop.xlane.xlu1 %1267 }
 0x68d   : > { %v1269_v4 = vmul.f32 %v1268_v16, %v1904_v8  ;;  %v537_v8 = vld [vmem:[%s2316_s12 + $0x48] sm:$0xff] }
 0x68e   : > { %1326 = vmatpush.msra.mxu0 %v537_v8 }
 0x68f   : > { %v1270_v0 = vadd.f32 1e-05, %v1269_v4 }
 0x690   : > { %1327 = vmatpush.msra.mxu0 %v536_v38 }
 0x691   : > { %1639 = vrsqrt.f32 %v1270_v0  ;;  %vm1277_vm2 = vweird.f32 %v1270_v0 }
 0x692   : > { %1328 = vmatpush.msra.mxu0 %v535_v62 }
 0x694   : > { %1329 = vmatpush.msra.mxu0 %v534_v43 }
 0x696   : > { %1330 = vmatpush.msra.mxu0 %v533_v17 }
 0x697   : > { %v1640_v46 = vpop.eup %1639 }
 0x698   : > { %v1272_v13 = vmul.f32 %v1640_v46, %v1270_v0  ;;  %vm1278_vm15 = vweird.f32 %v1640_v46  ;;  %1331 = vmatpush.msra.mxu0 %v532_v54 }
 0x699   : > { %vm1279_vm3 = vmor %vm1277_vm2, %vm1278_vm15 }
 0x69a   : > { %v1273_v51 = vmul.f32 %v1640_v46, %v1272_v13  ;;  %1332 = vmatpush.msra.mxu0 %v531_v56 }
 0x69c   : > { %v1274_v1 = vmul.f32 0.5, %v1273_v51  ;;  %1333 = vmatpush.msra.mxu0 %v530_v31 }
 0x69e   : > { %v1275_v5 = vsub.f32 1.5, %v1274_v1  ;;  %1334 = vmatpush.msra.mxu0 %v529_v40 }
 0x6a0   : > { %v1276_v7 = vmul.f32 %v1640_v46, %v1275_v5  ;;  %1335 = vmatpush.msra.mxu0 %v528_v33 }
 0x6a2   : > { %v1280_v11 = vsel %vm1279_vm3, %v1640_v46, %v1276_v7 }
 0x6a3   : > { %v1281_v32 = vmul.f32 %v1280_v11, %v1264_v52 }
 0x6a5   : > { %v1285_v15 = vmul.f32 %v1615_v30, %v1281_v32 }
 0x6a7   : > { %v1289_v23 = vadd.f32 %v1616_v39, %v1285_v15 }
 0x6a9   : > { %1483 = vmatmul.msk.f32.vlgmr.msrb.gmra.mxu3 %vm556_vm0, %v1289_v23 }
 0x72c   : > { %v1313_v60 = vpop.f32.mrf.mxu3 }
 0x72d   : > { %v1314_v50 = vadd.f32 %v1617_v37, %v1313_v60 }
 0x72f   : > { %v1316_v44 = vmax.f32 %v1314_v50, 0.0 }
 0x731   : > { %1336 = vmatmul.f32.vlgmr.msra.gmra.mxu0 %v1316_v44 }
 0x7ae   : > { %v1337_v9 = vpop.f32.mrf.mxu0 }
 0x7af   : > { %v1338_v22 = vadd.f32 %v1618_v42, %v1337_v9 }
 0x7b1   : > { %v1346_v24 = vsel %vm1345_vm5, 0.0, %v1338_v22 }
 0x7b2   : > { %v1347_v18 = vadd.f32 %v1346_v24, %v1289_v23 }
 0x7b4   : > { %1348 = vst.msk [vmem:[%s498_s4] sm:$0xff] %vm556_vm0, %v1347_v18 }
 0x7b5   : > { %1683 = shalt.err (!%p1680_p8)
}
 0x7b6   : > { %1492 = dma.vmem_to_hbm [thread:$0]  (%p1879_p5), %s1363_s6, 128, %s1365_s7, %s1350_s17  }
 0x7b7 PF: > { %p1504_p9 = scmp.ge.s32.totalorder %s1722_s16, 2  ;;  %s1376_s28 = sand.u32 1, %s1710_s29  }
 0x7b8   : > { %s1377_s20 = scalar_lea.sflag [#allocation4], %s1376_s28 }
 0x7b9   : > { %p1499_p10 = pnand %p1504_p9, %p1883_p6 }
 0x7bb   : > { %p1500_p11 = pneg %p1499_p10 }
 0x7bd   : > { %1705 = dma.done.wait (%p1500_p11), %s1377_s20, 128  }
 0x7be   : > { %1707 = vsyncadd (%p1500_p11), %s1377_s20, 4294967168  ;;  %s2336_s27 = sld [smem:[#allocation9_spill]]  ;;  %p25_p12 = scmp.ge.s32.totalorder %s1866_s19, 4  }
 0x7bf   : > { %s2337_s29 = smov %s1714_s30  ;;  %s2338_s30 = smov %s1718_s15 }
 0x7c0   : > { %s2340_s16 = smov %s1866_s19  ;;  %27 = sbr.rel (!%p25_p12) target bundleno = 10 (0xa), region = 122 }
 0x7c4   : > { %s2339_s15 = smov %s2336_s27 }
 0x7c5   :  { %1383 = vsyncpa [#allocation4], 1 }
 0x7c6   :  { %1385 = vsyncpa [#allocation4 + $0x1], 1 }
 0x7c7   :  { %1386 = vsyncpa [#allocation5], 1 }
 0x7c8   :  { %1388 = vsyncpa [#allocation5 + $0x1], 1 }

</bundles_post_ra>
